<compile_context>
chip_gen: v6e
topology: v6e:2x2x1
jax: 0.10.0
libtpu: 0.0.40
codegen_flags: <defaults>
</compile_context>

<pallas_src>
import functools

import jax
import jax.numpy as jnp
import numpy as np
from jax.experimental import pallas as pl
from jax.experimental.pallas import tpu as pltpu

LANES = 128  # hidden (32) and classes (4) zero-padded to one lane tile


def _classifier_kernel(adj_ref, deg_ref, slab_ref, wmat_ref, out_ref, *, n_nodes):
    """One grid step = Bg graphs packed block-diagonally (R = Bg * n_nodes rows)."""
    m = adj_ref[0]           # (R, R)  block-diagonal row-normalized adjacency
    deg = deg_ref[0]         # (1, R)  per-node in-degree feature (lane-major)

    slab = slab_ref[...]     # (8, LANES): rows 0..3 = w1, b1, b2, bc (zero-padded)
    w1 = slab[0:1, :]
    b1 = slab[1:2, :]
    b2 = slab[2:3, :]
    bc = slab[3:4, :]

    w2 = wmat_ref[0]         # (LANES, LANES) zero-padded W2
    wc = wmat_ref[1]         # (LANES, LANES) zero-padded Wc

    bg = out_ref.shape[1]    # graphs packed in this step
    rows = m.shape[0]        # bg * n_nodes

    # --- GCN layer 1 (in_feats = 1) ---
    # Mean-aggregation of the scalar degree feature: VPU multiply + lane reduce
    # (a width-1 MXU matvec would waste the whole array).
    agg1 = jnp.sum(m * deg, axis=1, keepdims=True)                      # (R, 1)
    # Linear(1 -> H) is a rank-1 outer product: broadcast on the VPU.
    # Padded lanes of w1/b1 are zero, so ReLU keeps them at exactly 0.
    h1 = jnp.maximum(agg1 * w1 + b1, 0.0)                               # (R, LANES)

    # --- GCN layer 2: full MXU passes, f32 accumulation ---
    agg2 = jnp.dot(m, h1, preferred_element_type=jnp.float32)           # (R, LANES)
    h2 = jnp.maximum(
        jnp.dot(agg2, w2, preferred_element_type=jnp.float32) + b2, 0.0)  # (R, LANES)

    # --- readout: per-graph mean over nodes (segment pool), then classify ---
    # Pooling matrix built from iotas (no integer division, no sublane reshape);
    # the 1/N of mean_nodes is folded into it. The pool runs on the MXU, which
    # has slack in this latency-bound kernel.
    row_id = jax.lax.broadcasted_iota(jnp.int32, (bg, rows), 1)
    seg_lo = jax.lax.broadcasted_iota(jnp.int32, (bg, rows), 0) * n_nodes
    in_seg = (row_id >= seg_lo) & (row_id < seg_lo + n_nodes)
    pool = jnp.where(in_seg, 1.0 / n_nodes, 0.0).astype(jnp.float32)    # (Bg, R)

    hg = jnp.dot(pool, h2, preferred_element_type=jnp.float32)          # (Bg, LANES)
    logits = jnp.dot(hg, wc, preferred_element_type=jnp.float32) + bc   # (Bg, LANES)

    # Lane-dense store, one graph per sublane row (no broadcast / masked vst).
    out_ref[0] = logits


def classifier_forward(norm_adj, in_deg, w1, b1, w2, b2, wc, bc,
                       *, graphs_per_step=16):
    """norm_adj: (B, N, N) row-normalized adjacency (adj[v,u] != 0 iff u->v,
    identity rows for zero-in-degree nodes). in_deg: (B, N) float in-degrees.
    Returns (B, n_classes) logits."""
    B, N, _ = norm_adj.shape
    H = w1.shape[1]
    C = wc.shape[1]
    assert H <= LANES and C <= LANES

    bg = graphs_per_step                 # 16 -> 256 MXU rows (v6e/v7x); 8 on v5e
    G = pl.cdiv(B, bg)                   # grid steps; >= 2 keeps both v7x TCs busy
    Bp = G * bg
    R = bg * N

    # Pad the batch with empty (identity-adjacency, zero-degree) graphs so every
    # grid step is full; padded outputs are sliced off at the end.
    if Bp != B:
        pad = Bp - B
        eye_pad = jnp.broadcast_to(jnp.eye(N, dtype=norm_adj.dtype), (pad, N, N))
        norm_adj = jnp.concatenate([norm_adj, eye_pad], axis=0)
        in_deg = jnp.concatenate([in_deg, jnp.zeros((pad, N), in_deg.dtype)], axis=0)

    # Block-diagonal packing: bg graphs per grid step -> one (R, R) adjacency,
    # so layer-2 aggregation is a single (R,R)@(R,LANES) MXU pass.
    adj_g = norm_adj.reshape(G, bg, N, N)
    eye_bg = jnp.eye(bg, dtype=norm_adj.dtype)
    packed_adj = jnp.einsum('gbij,bc->gbicj', adj_g, eye_bg).reshape(G, R, R)
    deg_row = in_deg.reshape(G, 1, R)

    # Parameter consolidation (fewer DMA descriptors / BlockSpecs):
    #   slab (8, LANES): rows 0..3 = w1, b1, b2, bc (zero-padded lanes)
    #   wmat (2, LANES, LANES): [0] = W2, [1] = Wc (zero-padded)
    slab = jnp.zeros((8, LANES), jnp.float32)
    slab = slab.at[0, :H].set(w1[0])
    slab = slab.at[1, :H].set(b1[0])
    slab = slab.at[2, :H].set(b2[0])
    slab = slab.at[3, :C].set(bc[0])
    wmat = jnp.zeros((2, LANES, LANES), jnp.float32)
    wmat = wmat.at[0, :H, :H].set(w2)
    wmat = wmat.at[1, :H, :C].set(wc)

    flops = G * (2 * R * R                     # layer-1 VPU aggregation
                 + 2 * R * R * LANES           # layer-2 aggregation
                 + 2 * R * LANES * LANES       # layer-2 linear
                 + 2 * bg * R * LANES          # segment-mean pooling
                 + 2 * bg * LANES * LANES)     # classifier
    bytes_accessed = 4 * (packed_adj.size + deg_row.size + slab.size
                          + wmat.size + Bp * LANES)

    kernel = functools.partial(_classifier_kernel, n_nodes=N)
    out = pl.pallas_call(
        kernel,
        out_shape=jax.ShapeDtypeStruct((G, bg, LANES), jnp.float32),
        grid=(G,),
        in_specs=[
            pl.BlockSpec((1, R, R), lambda g: (g, 0, 0)),          # packed adjacency
            pl.BlockSpec((1, 1, R), lambda g: (g, 0, 0)),          # in-degree rows
            pl.BlockSpec((8, LANES), lambda g: (0, 0)),            # small-param slab
            pl.BlockSpec((2, LANES, LANES), lambda g: (0, 0, 0)),  # W2 / Wc
        ],
        out_specs=pl.BlockSpec((1, bg, LANES), lambda g: (g, 0, 0)),
        compiler_params=pltpu.CompilerParams(
            dimension_semantics=("parallel",),
            vmem_limit_bytes=32 << 20),        # v7x-safe scoped budget
        cost_estimate=pl.CostEstimate(
            flops=flops, transcendentals=0, bytes_accessed=bytes_accessed),
    )(packed_adj, deg_row, slab, wmat)

    return out.reshape(Bp, LANES)[:B, :C]


def linear_params(key, fan_in, fan_out):
    """Deterministic PyTorch-style (uniform +/- 1/sqrt(fan_in)) init, pre-transposed."""
    kw, kb = jax.random.split(key)
    bound = 1.0 / np.sqrt(fan_in)
    w = jax.random.uniform(kw, (fan_in, fan_out), minval=-bound, maxval=bound,
                           dtype=jnp.float32)
    b = jax.random.uniform(kb, (1, fan_out), minval=-bound, maxval=bound,
                           dtype=jnp.float32)
    return w, b


def reference_forward(norm_adj, h0, w1, b1, w2, b2, wc, bc):
    """Plain-JAX reference, per graph (vmapped over the batch)."""
    def single(m, x):
        h = jnp.maximum(m @ x @ w1 + b1, 0.0)
        h = jnp.maximum(m @ h @ w2 + b2, 0.0)
        hg = jnp.mean(h, axis=0, keepdims=True)
        return (hg @ wc + bc)[0]
    return jax.vmap(single)(norm_adj, h0)                # (B, n_classes)


if __name__ == "__main__":
    B, N, IN_DIM, HIDDEN, N_CLASSES = 24, 16, 1, 32, 4
    GRAPHS_PER_STEP = 16   # 256-row MXU tiles (v6e/v7x); use 8 (128 rows) on v5e

    key = jax.random.PRNGKey(0)
    k_adj, k1, k2, k3 = jax.random.split(key, 4)

    # Deterministic random batch of graphs (no self-loops). adj[b, v, u] = edge u -> v.
    adj = jax.random.bernoulli(k_adj, 0.3, (B, N, N)).astype(jnp.float32)
    eye = jnp.eye(N, dtype=jnp.float32)
    adj = adj * (1.0 - eye)

    in_deg = adj.sum(axis=2)                              # (B, N)
    h0 = in_deg[:, :, None]                               # (B, N, 1) reference feature

    # Row-normalize for mean aggregation; zero-in-degree nodes keep their own
    # feature (DGL update_all leaves nodes with no messages untouched).
    safe_deg = jnp.maximum(in_deg, 1.0)
    norm_adj = adj / safe_deg[:, :, None]
    norm_adj = jnp.where((in_deg == 0.0)[:, :, None], eye[None, :, :], norm_adj)

    # Parameters (deterministic, synthetic), pre-transposed as (in, out).
    w1, b1 = linear_params(k1, IN_DIM, HIDDEN)      # GCN layer 1 linear
    w2, b2 = linear_params(k2, HIDDEN, HIDDEN)      # GCN layer 2 linear
    wc, bc = linear_params(k3, HIDDEN, N_CLASSES)   # classify linear

    out = classifier_forward(norm_adj, in_deg, w1, b1, w2, b2, wc, bc,
                             graphs_per_step=GRAPHS_PER_STEP)
    out = jax.block_until_ready(out)

    ref = reference_forward(norm_adj, h0, w1, b1, w2, b2, wc, bc)
    np.testing.assert_allclose(np.asarray(out), np.asarray(ref), rtol=1e-5, atol=1e-5)

    print("KERNEL_OK")
</pallas_src>

<mosaic_0001>
module attributes {stable_mosaic.version = 11 : i64} {
  func.func @_classifier_kernel(%arg0: i32, %arg1: memref<1x256x256xf32, #tpu.memory_space<vmem>>, %arg2: memref<1x1x256xf32, #tpu.memory_space<vmem>>, %arg3: memref<8x128xf32, #tpu.memory_space<vmem>>, %arg4: memref<2x128x128xf32, #tpu.memory_space<vmem>>, %arg5: memref<1x16x128xf32, #tpu.memory_space<vmem>>) attributes {dimension_semantics = [#tpu.dimension_semantics<parallel>], iteration_bounds = array<i64: 2>, scalar_prefetch = 0 : i64, scratch_operands = 0 : i64, tpu.core_type = #tpu.core_type<tc>, window_params = [{transform_indices = @transform_0, window_bounds = array<i64: 1, 256, 256>}, {transform_indices = @transform_1, window_bounds = array<i64: 1, 1, 256>}, {pipeline_mode = #tpu.pipeline_mode<synchronous>, transform_indices = @transform_2, window_bounds = array<i64: 8, 128>}, {pipeline_mode = #tpu.pipeline_mode<synchronous>, transform_indices = @transform_3, window_bounds = array<i64: 2, 128, 128>}, {transform_indices = @transform_4, window_bounds = array<i64: 1, 16, 128>}]} {
    %c0 = arith.constant 0 : index
    %c0_0 = arith.constant 0 : index
    %c0_1 = arith.constant 0 : index
    %0 = vector.load %arg1[%c0, %c0_0, %c0_1] : memref<1x256x256xf32, #tpu.memory_space<vmem>>, vector<1x256x256xf32>
    %1 = vector.shape_cast %0 : vector<1x256x256xf32> to vector<256x256xf32>
    %c0_2 = arith.constant 0 : index
    %c0_3 = arith.constant 0 : index
    %c0_4 = arith.constant 0 : index
    %2 = vector.load %arg2[%c0_2, %c0_3, %c0_4] : memref<1x1x256xf32, #tpu.memory_space<vmem>>, vector<1x1x256xf32>
    %3 = vector.shape_cast %2 : vector<1x1x256xf32> to vector<1x256xf32>
    %c0_5 = arith.constant 0 : index
    %c0_6 = arith.constant 0 : index
    %4 = vector.load %arg3[%c0_5, %c0_6] : memref<8x128xf32, #tpu.memory_space<vmem>>, vector<8x128xf32>
    %5 = vector.extract_strided_slice %4 {offsets = [0, 0], sizes = [1, 128], strides = [1, 1]} : vector<8x128xf32> to vector<1x128xf32>
    %6 = vector.extract_strided_slice %4 {offsets = [1, 0], sizes = [1, 128], strides = [1, 1]} : vector<8x128xf32> to vector<1x128xf32>
    %7 = vector.extract_strided_slice %4 {offsets = [2, 0], sizes = [1, 128], strides = [1, 1]} : vector<8x128xf32> to vector<1x128xf32>
    %8 = vector.extract_strided_slice %4 {offsets = [3, 0], sizes = [1, 128], strides = [1, 1]} : vector<8x128xf32> to vector<1x128xf32>
    %c0_7 = arith.constant 0 : index
    %c0_8 = arith.constant 0 : index
    %c0_9 = arith.constant 0 : index
    %9 = vector.load %arg4[%c0_7, %c0_8, %c0_9] : memref<2x128x128xf32, #tpu.memory_space<vmem>>, vector<1x128x128xf32>
    %10 = vector.shape_cast %9 : vector<1x128x128xf32> to vector<128x128xf32>
    %c1 = arith.constant 1 : index
    %c0_10 = arith.constant 0 : index
    %c0_11 = arith.constant 0 : index
    %11 = vector.load %arg4[%c1, %c0_10, %c0_11] : memref<2x128x128xf32, #tpu.memory_space<vmem>>, vector<1x128x128xf32>
    %12 = vector.shape_cast %11 : vector<1x128x128xf32> to vector<128x128xf32>
    %13 = vector.broadcast %3 : vector<1x256xf32> to vector<256x256xf32>
    %14 = arith.mulf %1, %13 : vector<256x256xf32>
    %cst = arith.constant dense<0.000000e+00> : vector<256xf32>
    %15 = vector.multi_reduction <add>, %14, %cst [1] : vector<256x256xf32> to vector<256xf32>
    %16 = vector.shape_cast %15 : vector<256xf32> to vector<256x1xf32>
    %17 = vector.broadcast %16 : vector<256x1xf32> to vector<256x128xf32>
    %18 = vector.broadcast %5 : vector<1x128xf32> to vector<256x128xf32>
    %19 = arith.mulf %17, %18 : vector<256x128xf32>
    %20 = vector.broadcast %6 : vector<1x128xf32> to vector<256x128xf32>
    %21 = arith.addf %19, %20 : vector<256x128xf32>
    %cst_12 = arith.constant 0.000000e+00 : f32
    %22 = vector.broadcast %cst_12 : f32 to vector<256x128xf32>
    %23 = arith.maximumf %21, %22 : vector<256x128xf32>
    %cst_13 = arith.constant dense<0.000000e+00> : vector<256x128xf32>
    %24 = tpu.matmul %1, %23, %cst_13 {dimension_numbers = #tpu.dot_dimension_numbers<[1], [0], [0], [1], [0, 0, 1, 1], [], []>} : vector<256x256xf32>, vector<256x128xf32>, vector<256x128xf32> -> vector<256x128xf32>
    %cst_14 = arith.constant dense<0.000000e+00> : vector<256x128xf32>
    %25 = tpu.matmul %24, %10, %cst_14 {dimension_numbers = #tpu.dot_dimension_numbers<[1], [0], [0], [1], [0, 0, 1, 1], [], []>} : vector<256x128xf32>, vector<128x128xf32>, vector<256x128xf32> -> vector<256x128xf32>
    %26 = vector.broadcast %7 : vector<1x128xf32> to vector<256x128xf32>
    %27 = arith.addf %25, %26 : vector<256x128xf32>
    %cst_15 = arith.constant 0.000000e+00 : f32
    %28 = vector.broadcast %cst_15 : f32 to vector<256x128xf32>
    %29 = arith.maximumf %27, %28 : vector<256x128xf32>
    %30 = tpu.iota {dimensions = array<i32: 1>} : vector<16x256xi32>
    %31 = tpu.iota {dimensions = array<i32: 0>} : vector<16x256xi32>
    %c16_i32 = arith.constant 16 : i32
    %32 = vector.broadcast %c16_i32 : i32 to vector<16x256xi32>
    %33 = arith.muli %31, %32 : vector<16x256xi32>
    %34 = arith.cmpi sge, %30, %33 : vector<16x256xi32>
    %c16_i32_16 = arith.constant 16 : i32
    %35 = vector.broadcast %c16_i32_16 : i32 to vector<16x256xi32>
    %36 = arith.addi %33, %35 : vector<16x256xi32>
    %37 = arith.cmpi slt, %30, %36 : vector<16x256xi32>
    %38 = arith.andi %34, %37 : vector<16x256xi1>
    %cst_17 = arith.constant 6.250000e-02 : f32
    %cst_18 = arith.constant 0.000000e+00 : f32
    %39 = vector.broadcast %cst_17 : f32 to vector<16x256xf32>
    %40 = vector.broadcast %cst_18 : f32 to vector<16x256xf32>
    %41 = arith.select %38, %39, %40 : vector<16x256xi1>, vector<16x256xf32>
    %cst_19 = arith.constant dense<0.000000e+00> : vector<16x128xf32>
    %42 = tpu.matmul %41, %29, %cst_19 {dimension_numbers = #tpu.dot_dimension_numbers<[1], [0], [0], [1], [0, 0, 1, 1], [], []>} : vector<16x256xf32>, vector<256x128xf32>, vector<16x128xf32> -> vector<16x128xf32>
    %cst_20 = arith.constant dense<0.000000e+00> : vector<16x128xf32>
    %43 = tpu.matmul %42, %12, %cst_20 {dimension_numbers = #tpu.dot_dimension_numbers<[1], [0], [0], [1], [0, 0, 1, 1], [], []>} : vector<16x128xf32>, vector<128x128xf32>, vector<16x128xf32> -> vector<16x128xf32>
    %44 = vector.broadcast %8 : vector<1x128xf32> to vector<16x128xf32>
    %45 = arith.addf %43, %44 : vector<16x128xf32>
    %c0_21 = arith.constant 0 : index
    %c0_22 = arith.constant 0 : index
    %c0_23 = arith.constant 0 : index
    %46 = vector.load %arg5[%c0_21, %c0_22, %c0_23] : memref<1x16x128xf32, #tpu.memory_space<vmem>>, vector<1x16x128xf32>
    %47 = vector.shape_cast %46 : vector<1x16x128xf32> to vector<16x128xf32>
    %48 = vector.shape_cast %45 : vector<16x128xf32> to vector<1x16x128xf32>
    tpu.vector_store %arg5[%c0_21, %c0_22, %c0_23], %48 {strides = array<i32>} : memref<1x16x128xf32, #tpu.memory_space<vmem>>, vector<1x16x128xf32>,
    return
  }
  func.func @transform_0(%arg0: i32) -> (i32, i32, i32) {
    %c0_i32 = arith.constant 0 : i32
    %c0_i32_0 = arith.constant 0 : i32
    %c0_i32_1 = arith.constant 0 : i32
    return %arg0, %c0_i32, %c0_i32_0 : i32, i32, i32
  }
  func.func @transform_1(%arg0: i32) -> (i32, i32, i32) {
    %c0_i32 = arith.constant 0 : i32
    %c0_i32_0 = arith.constant 0 : i32
    %c0_i32_1 = arith.constant 0 : i32
    return %arg0, %c0_i32, %c0_i32_0 : i32, i32, i32
  }
  func.func @transform_2(%arg0: i32) -> (i32, i32) {
    %c0_i32 = arith.constant 0 : i32
    %c0_i32_0 = arith.constant 0 : i32
    %c0_i32_1 = arith.constant 0 : i32
    return %c0_i32, %c0_i32_0 : i32, i32
  }
  func.func @transform_3(%arg0: i32) -> (i32, i32, i32) {
    %c0_i32 = arith.constant 0 : i32
    %c0_i32_0 = arith.constant 0 : i32
    %c0_i32_1 = arith.constant 0 : i32
    %c0_i32_2 = arith.constant 0 : i32
    return %c0_i32, %c0_i32_0, %c0_i32_1 : i32, i32, i32
  }
  func.func @transform_4(%arg0: i32) -> (i32, i32, i32) {
    %c0_i32 = arith.constant 0 : i32
    %c0_i32_0 = arith.constant 0 : i32
    %c0_i32_1 = arith.constant 0 : i32
    return %arg0, %c0_i32, %c0_i32_0 : i32, i32, i32
  }
}

</mosaic_0001>

<bundles_post_ra>
// kernel: tpu_custom_call.1
= control target key start
LH: loop header
LB: loop body
LE: loop exit
PB: predicated region body
PF: predicated region fallthrough
CT: control target
= control target key end

     0   :  { %s2853_s0 = inlined_call_operand.hbm [shape: f32[2,256,256], index: 0, kind: input, shape index: {}]   ;;  %s2854_s1 = inlined_call_operand.hbm [shape: f32[2,1,256], index: 1, kind: input, shape index: {}]   ;;  %s2855_s2 = inlined_call_operand.hbm [shape: f32[8,128], index: 2, kind: input, shape index: {}]   ;;  %s2856_s3 = inlined_call_operand.hbm [shape: f32[2,128,128], index: 3, kind: input, shape index: {}]   ;;  %s2857_s4 = inlined_call_operand.hbm [shape: f32[2,16,128], index: 4, kind: output, shape index: {}]  }
   0x1   :  { %2887 = sst [smem:[#allocation36_spill]] %s2855_s2 }
   0x2   :  { %9 = vsyncpa [#allocation3], 0 }
   0x3   :  { %11 = vsyncpa [#allocation3 + $0x1], 0 }
   0x4   :  { %12 = vsyncpa [#allocation6], 0 }
   0x5   :  { %14 = vsyncpa [#allocation6 + $0x1], 0 }
   0x6   :  { %15 = vsyncpa [#allocation9], 0 }
   0x7   :  { %16 = vsyncpa [#allocation4], 0 }
   0x8   :  { %18 = vsyncpa [#allocation4 + $0x1], 0  ;;  %s2005_s15 = smov 0   ;;  %s2007_s16 = smov 0  }
   0x9   :  { %s2009_s17 = smov 0   ;;  %s2011_s18 = smov 0  }
   0xa LB: > { %s2026_s19 = sadd.s32 4294967295, %s1965_s18   ;;  %s1452_s20 = sadd.s32 4294967294, %s1965_s18   ;;  %s1965_s18 = sphi %s2011_s18, %s2955_s18   ;;  %s1961_s17 = sphi %s2009_s17, %s2954_s17   ;;  %s1957_s16 = sphi %s2007_s16, %s2953_s16   ;;  %s1953_s15 = sphi %s2005_s15, %s2952_s15  }
   0xb   : > { %s2030_s21 = sadd.s32 1, %s1965_s18   ;;  %s31_s22 = sadd.s32 1, %s1961_s17 }
   0xc   : > { %s28_s23 = ssub.s32 %s1965_s18, %s2030_s21  ;;  %p38_p0 = scmp.ne.s32.totalorder %s1961_s17, %s1957_s16 }
   0xd   : > { %p29_p1 = scmp.eq.s32.totalorder %s28_s23, 0  ;;  %p39_p2 = scmp.eq.s32.totalorder %s1965_s18, 0 }
   0xe   : > { %p44_p3 = scmp.ne.s32.totalorder %s1957_s16, %s1953_s15  ;;  %p2858_p4 = scmp.eq.s32.totalorder %s2026_s19, 0 }
   0xf   : > { %s2042_s24 = scalar_select %p29_p1, %s1961_s17, %s31_s22  }
  0x10   : > { %p2044_p5 = por %p39_p2, %p38_p0  ;;  %p2050_p6 = por %p2858_p4, %p44_p3 }
  0x11   : > { %2888 = sst [smem:[#allocation16_spill]] %s2042_s24  ;;  %p136_p7 = scmp.eq.s32.totalorder %s2026_s19, 1 }
  0x12   : > { %s2890_s26 = scalar_select %p2050_p6, 1, 0 }
  0x13   : > { %p142_p8 = scmp.eq.s32.totalorder %s1452_s20, 1  ;;  %p1453_p9 = scmp.ge.s32.totalorder %s1965_s18, 1 }
  0x14   : > { %p149_p10 = scmp.lt.s32.totalorder %s1965_s18, 3  ;;  %p2057_p11 = por %p136_p7, %p38_p0 }
  0x15   : > { %p2061_p12 = por %p142_p8, %p44_p3  ;;  %s1967_s30 = smov [#allocation7]  }
  0x16   : > { %s2891_s27 = scalar_select %p2057_p11, 1, 0 }
  0x17   : > { %s2892_s28 = scalar_select %p2061_p12, 1, 0 }
  0x18   : > { %p2065_p13 = pnand %p1453_p9, %p149_p10  ;;  %s162_s5 = sshll.u32 %s1967_s30, 4  ;;  %s163_s5 = int_to_ptr.vmem [resolvable:$true] %s162_s5 }
  0x19   : > { %p1734_p4 = scmp.lt.s32.totalorder %s1965_s18, 2  ;;  %p2894_p0 = scmp.eq.s32.totalorder %s2026_s19, 0 }
  0x1a   : > { %s2893_s29 = scalar_select %p2065_p13, 1, 0 }
  0x1b   : > { %p1714_p2 = pneg %p2065_p13  ;;  %p2081_p3 = pnand %p1734_p4, %p2044_p5 }
  0x1c   : > { %s1968_s8 = smov [#allocation8]   ;;  %s1792_s10 = scalar_lea.vmem %s163_s5, 128 }
  0x1d   : > { %p2075_p7 = pnand %p1714_p2, %p2894_p0  ;;  %s172_s9 = sshll.u32 %s1968_s8, 4  ;;  %s173_s9 = int_to_ptr.vmem [resolvable:$true] %s172_s9 }
  0x1e   : > { %p1793_p9 = scmp.ne.s32.totalorder %s163_s5, %s1792_s10  ;;  %p1800_p0 = scmp.lt.s32.totalorder %s163_s5, %s163_s5 }
  0x1f   : > { %p1783_p8 = pneg %p2075_p7  ;;  %p1801_p1 = scmp.lt.s32.totalorder %s1792_s10, %s1792_s10 }
  0x21   : > { %p1795_p10 = pnand %p1793_p9, %p1783_p8  ;;  %p1802_p12 = por %p1801_p1, %p1800_p0 }
  0x23   : > { %p1796_p2 = pneg %p1795_p10 }
  0x25   : > { %p1803_p11 = pnand %p1802_p12, %p1796_p2 }
  0x27   : > { %1806 = shalt.err (!%p1803_p11)
}
  0x28   : > { %s2897_s2 = sld [smem:[#allocation36_spill]]  ;;  %s2096_s13 = sand.u32 1, %s1961_s17  }
  0x29   : > { %s1818_s14 = scalar_lea.vmem %s173_s9, 4096  ;;  %p1826_p10 = scmp.lt.s32.totalorder %s173_s9, %s173_s9 }
  0x2a   : > { %p1819_p4 = scmp.ne.s32.totalorder %s173_s9, %s1818_s14  ;;  %p1827_p1 = scmp.lt.s32.totalorder %s1818_s14, %s1818_s14 }
  0x2c   : > { %p1821_p5 = pnand %p1819_p4, %p1783_p8  ;;  %p1828_p12 = por %p1827_p1, %p1826_p10 }
  0x2e   : > { %1717 = dma.hbm_to_vmem [thread:$0]  (!%p2075_p7), %s2897_s2, 128, %s163_s5, [#allocation6]  }
  0x2f   : > { %p1822_p9 = pneg %p1821_p5 }
  0x31   : > { %p1829_p11 = pnand %p1828_p12, %p1822_p9 }
  0x33   : > { %1832 = shalt.err (!%p1829_p11)
}
  0x34   : > { %s1969_s20 = smov 128   ;;  %s1970_s22 = smov 8  }
  0x35   : > { %1720 = dma.hbm_to_vmem [thread:$0]  (!%p2075_p7), %s2856_s3, 4096, %s173_s9, [#allocation9], %s1969_s20, %s1969_s20, %s1970_s22  }
  0x36   : > { %s1457_s30 = sshll.u32 %s2096_s13, 9  ;;  %s1478_s5 = sshll.u32 %s1965_s18, 13 }
  0x37   : > { %s2111_s11 = scalar_lea.hbm %s2853_s0, %s1478_s5  ;;  %s190_s12 = scalar_lea.vmem [#allocation2], %s1457_s30 }
  0x38   : > { %s197_s14 = sshll.u32 %s190_s12, 4  ;;  %s207_s2 = sand.u32 1, %s1965_s18   ;;  %s2113_s14 = int_to_ptr.vmem [resolvable:$true] %s197_s14 }
  0x39   : > { %s187_s6 = scalar_lea.sflag [#allocation3], %s2096_s13  ;;  %s1833_s24 = scalar_lea.hbm %s2111_s11, 8192 }
  0x3a   : > { %p1834_p8 = scmp.ne.s32.totalorder %s2111_s11, %s1833_s24  ;;  %p1835_p7 = pneg %p2081_p3 }
  0x3b   : > { %s1838_s22 = scalar_lea.hbm %s2853_s0, 16384  ;;  %p1839_p4 = scmp.lt.s32.totalorder %s2111_s11, %s2853_s0 }
  0x3c   : > { %p1836_p2 = pnand %p1835_p7, %p1834_p8  ;;  %p1840_p5 = scmp.lt.s32.totalorder %s1838_s22, %s1833_s24 }
  0x3e   : > { %p1837_p0 = pneg %p1836_p2  ;;  %p1841_p9 = por %p1840_p5, %p1839_p4 }
  0x40   : > { %p1842_p10 = pnand %p1841_p9, %p1837_p0 }
  0x42   : > { %1845 = shalt.err (!%p1842_p10)
}
  0x43   : > { %s1846_s30 = scalar_lea.vmem %s2113_s14, 8192  ;;  %s1971_s5 = smov [#allocation2]  }
  0x44   : > { %p1847_p1 = scmp.ne.s32.totalorder %s2113_s14, %s1846_s30  ;;  %s1851_s8 = sshll.u32 %s1971_s5, 4  ;;  %s1852_s8 = int_to_ptr.vmem [resolvable:$false] %s1851_s8 }
  0x45   : > { %s1853_s10 = scalar_lea.vmem %s1852_s8, 16384  ;;  %p1854_p8 = scmp.lt.s32.totalorder %s2113_s14, %s1852_s8 }
  0x46   : > { %p1849_p12 = pnand %p1847_p1, %p1835_p7  ;;  %p1855_p2 = scmp.lt.s32.totalorder %s1853_s10, %s1846_s30 }
  0x48   : > { %p1850_p11 = pneg %p1849_p12  ;;  %p1856_p6 = por %p1855_p2, %p1854_p8 }
  0x4a   : > { %p1857_p4 = pnand %p1856_p6, %p1850_p11 }
  0x4c   : > { %1860 = shalt.err (!%p1857_p4)
}
  0x4d   : > { %s1972_s24 = smov 256   ;;  %s1973_s12 = smov 16  }
  0x4e   : > { %1724 = dma.hbm_to_vmem [thread:$0]  (!%p2081_p3), %s2111_s11, 8192, %s2113_s14, %s187_s6, %s1972_s24, %s1972_s24, %s1973_s12  }
  0x4f   : > { %s1460_s9 = sshll.u32 %s2096_s13, 1  ;;  %s1479_s20 = sshll.u32 %s1965_s18, 5 }
  0x50   : > { %s2148_s25 = scalar_lea.hbm %s2854_s1, %s1479_s20  ;;  %s211_s30 = scalar_lea.vmem [#allocation5], %s1460_s9 }
  0x51   : > { %s219_s5 = sshll.u32 %s211_s30, 4  ;;  %s208_s8 = scalar_lea.sflag [#allocation6], %s207_s2  ;;  %s220_s5 = int_to_ptr.vmem [resolvable:$true] %s219_s5 }
  0x52   : > { %s1861_s10 = scalar_lea.hbm %s2148_s25, 32  ;;  %s1866_s14 = scalar_lea.hbm %s2854_s1, 64 }
  0x53   : > { %p1862_p6 = scmp.ne.s32.totalorder %s2148_s25, %s1861_s10  ;;  %p1867_p9 = scmp.lt.s32.totalorder %s2148_s25, %s2854_s1 }
  0x54   : > { %p1868_p10 = scmp.lt.s32.totalorder %s1866_s14, %s1861_s10 }
  0x55   : > { %p1864_p0 = pnand %p1862_p6, %p1835_p7 }
  0x56   : > { %p1869_p1 = por %p1868_p10, %p1867_p9 }
  0x57   : > { %p1865_p5 = pneg %p1864_p0 }
  0x59   : > { %p1870_p12 = pnand %p1869_p1, %p1865_p5 }
  0x5b   : > { %1873 = shalt.err (!%p1870_p12)
}
  0x5c   : > { %s1874_s12 = scalar_lea.vmem %s220_s5, 32  ;;  %s1974_s2 = smov [#allocation5]  }
  0x5d   : > { %p1875_p11 = scmp.ne.s32.totalorder %s220_s5, %s1874_s12  ;;  %s1879_s9 = sshll.u32 %s1974_s2, 4  ;;  %s1880_s9 = int_to_ptr.vmem [resolvable:$false] %s1879_s9 }
  0x5e   : > { %s1881_s20 = scalar_lea.vmem %s1880_s9, 64  ;;  %p1882_p4 = scmp.lt.s32.totalorder %s220_s5, %s1880_s9 }
  0x5f   : > { %p1877_p8 = pnand %p1875_p11, %p1835_p7  ;;  %p1883_p6 = scmp.lt.s32.totalorder %s1881_s20, %s1874_s12 }
  0x61   : > { %p1878_p2 = pneg %p1877_p8  ;;  %p1884_p0 = por %p1883_p6, %p1882_p4 }
  0x63   : > { %p1885_p13 = pnand %p1884_p0, %p1878_p2 }
  0x65   : > { %1888 = shalt.err (!%p1885_p13)
}
  0x66   : > { %1727 = dma.hbm_to_vmem [thread:$0]  (!%p2081_p3), %s2148_s25, 32, %s220_s5, %s208_s8  }
  0x67   : > { %p2898_p5 = scmp.ne.s32.totalorder %s2893_s29, 0 }
  0x69   : > { %228 = sbr.rel (%p2898_p5) target bundleno = 1303 (0x517), region = 36 }
  0x6e   : > { %s2173_s22 = sand.u32 1, %s1957_s16   ;;  %p2899_p7 = scmp.ne.s32.totalorder %s2890_s26, 0 }
  0x6f   : > { %s1464_s23 = sshll.u32 %s2173_s22, 9  ;;  %s231_s30 = scalar_lea.sflag [#allocation3], %s2173_s22 }
  0x70   : > { %s2177_s10 = scalar_lea.vmem [#allocation2], %s1464_s23 }
  0x71   : > { %1932 = dma.done.wait (%p2899_p7), %s231_s30, 8192  }
  0x72   : > { %1934 = vsyncadd (%p2899_p7), %s231_s30, 4294959104  ;;  %s239_s29 = sand.u32 1, %s2026_s19   ;;  %s1465_s7 = sshll.u32 %s2173_s22, 1 }
  0x73   : > { %s240_s25 = scalar_lea.sflag [#allocation6], %s239_s29  ;;  %s243_s5 = scalar_lea.vmem [#allocation5], %s1465_s7 }
  0x74   : > { %1936 = dma.done.wait (%p2899_p7), %s240_s25, 32  }
  0x75   : > { %1938 = vsyncadd (%p2899_p7), %s240_s25, 4294967264  ;;  %p2900_p13 = scmp.eq.s32.totalorder %s2026_s19, 0 }
  0x77   : > { %1940 = dma.done.wait (%p2900_p13), [#allocation6], 128   ;;  %p2901_p3 = pmov %p2900_p13 }
  0x79   : > { %1942 = vsyncadd (%p2901_p3), [#allocation6], 4294967168  ;;  %p2902_p9 = pmov %p2901_p3 }
  0x7a   : > { %p2903_p10 = pmov %p2901_p3 }
  0x7b   : > { %1944 = dma.done.wait (%p2902_p9), [#allocation9], 4096  }
  0x7c   : > { %1946 = vsyncadd (%p2903_p10), [#allocation9], 4294963200  ;;  %v2862_v0 = vlaneseq  ;;  %v2203_v4 = vld [vmem:[%s2177_s10 + $0xf0] sm:$0xff]  ;;  %v2206_v5 = vld [vmem:[%s2177_s10 + $0xf8] sm:$0xff]  ;;  %s1468_s26 = sshll.u32 %s2173_s22, 4  ;;  %s1480_s11 = sshll.u32 %s2026_s19, 8 }
  0x7d   : > { %v345_v6 = vld [vmem:[%s243_s5] sm:$0x3]  ;;  %v2220_v10 = vld [vmem:[%s2177_s10 + $0xe8] sm:$0xff]  ;;  %v2223_v11 = vld [vmem:[%s2177_s10 + $0xd0] sm:$0xff]  ;;  %s280_s8 = scalar_lea.vmem [#allocation10], %s1468_s26  ;;  %s2810_s24 = scalar_lea.hbm %s2857_s4, %s1480_s11 }
  0x7e   : > { %v2198_v1 = vshrl.u32 %v2862_v0, 7  ;;  %v2217_v9 = vld [vmem:[%s2177_s10 + $0xe0] sm:$0xff]  ;;  %v2226_v12 = vld [vmem:[%s2177_s10 + $0xd8] sm:$0xff]  ;;  %v2232_v14 = vld [vmem:[%s2177_s10 + $0xc8] sm:$0xff]  ;;  %s1337_s13 = sshll.u32 %s280_s8, 4  ;;  %s1324_s12 = scalar_lea.sflag [#allocation4], %s2173_s22  ;;  %s2805_s13 = int_to_ptr.vmem [resolvable:$true] %s1337_s13 }
  0x7f   : > { %v2229_v13 = vld [vmem:[%s2177_s10 + $0xc0] sm:$0xff]  ;;  %v2251_v23 = vld [vmem:[%s2177_s10 + $0xb0] sm:$0xff]  ;;  %v2254_v24 = vld [vmem:[%s2177_s10 + $0xb8] sm:$0xff]  ;;  %s1889_s2 = scalar_lea.vmem %s2805_s13, 256  ;;  %p2948_p12 = scmp.ne.s32.totalorder %s2891_s27, 0 }
  0x80   : > { %2904 = vst [vmem:[#allocation17_spill] sm:$0xff] %v2198_v1  ;;  %v2866_v2 = vsub.s32 0, %v2198_v1  ;;  %v2865_v3 = vsub.s32 1, %v2198_v1  ;;  %v2257_v26 = vld [vmem:[%s2177_s10 + $0xa0] sm:$0xff]  ;;  %v2260_v27 = vld [vmem:[%s2177_s10 + $0xa8] sm:$0xff]  ;;  %v2271_v35 = vld [vmem:[%s2177_s10 + $0x90] sm:$0xff]  ;;  %p1890_p1 = scmp.ne.s32.totalorder %s2805_s13, %s1889_s2 }
  0x81   : > { %v2274_v36 = vld [vmem:[%s2177_s10 + $0x98] sm:$0xff]  ;;  %v2277_v37 = vld [vmem:[%s2177_s10 + $0x80] sm:$0xff]  ;;  %v2280_v38 = vld [vmem:[%s2177_s10 + $0x88] sm:$0xff]  ;;  %s1977_s19 = smov [#allocation10]  }
  0x82   : > { %v2210_v7 = vrot.slane %v345_v6, %v2866_v2  ;;  %v2214_v8 = vrot.slane %v345_v6, %v2865_v3  ;;  %v2291_v45 = vld [vmem:[%s2177_s10 + $0x70] sm:$0xff]  ;;  %v2294_v46 = vld [vmem:[%s2177_s10 + $0x78] sm:$0xff]  ;;  %v282_v47 = vld [vmem:[%s2177_s10 + $0x8] sm:$0xff]  ;;  %p1891_p11 = pnand %p1890_p1, %p2948_p12  ;;  %s1893_s9 = sshll.u32 %s1977_s19, 4  ;;  %s1894_s9 = int_to_ptr.vmem [resolvable:$false] %s1893_s9 }
  0x83   : > { %v2298_v48 = vld [vmem:[%s2177_s10 + $0x60] sm:$0xff]  ;;  %v2301_v49 = vld [vmem:[%s2177_s10 + $0x68] sm:$0xff]  ;;  %719 = vmatprep.mubr.f32.mxu0 %v282_v47  ;;  %v2312_v56 = vld [vmem:[%s2177_s10 + $0x50] sm:$0xff]  ;;  %s1895_s20 = scalar_lea.vmem %s1894_s9, 512  ;;  %p1896_p2 = scmp.lt.s32.totalorder %s2805_s13, %s1894_s9 }
  0x84   : > { %v421_v15 = vmul.f32 %v2210_v7, %v2203_v4  ;;  %v422_v16 = vmul.f32 %v2214_v8, %v2206_v5  ;;  %v419_v17 = vmul.f32 %v2210_v7, %v2217_v9  ;;  %v420_v18 = vmul.f32 %v2214_v8, %v2220_v10  ;;  %v2315_v57 = vld [vmem:[%s2177_s10 + $0x58] sm:$0xff]  ;;  %v2318_v58 = vld [vmem:[%s2177_s10 + $0x40] sm:$0xff]  ;;  %v2321_v59 = vld [vmem:[%s2177_s10 + $0x48] sm:$0xff]  ;;  %p1892_p8 = pneg %p1891_p11  ;;  %p1897_p4 = scmp.lt.s32.totalorder %s1895_s20, %s1889_s2 }
  0x85   : > { %v417_v19 = vmul.f32 %v2210_v7, %v2223_v11  ;;  %v418_v20 = vmul.f32 %v2214_v8, %v2226_v12  ;;  %v415_v21 = vmul.f32 %v2210_v7, %v2229_v13  ;;  %v416_v22 = vmul.f32 %v2214_v8, %v2232_v14  ;;  %v2458_v3 = vld [vmem:[%s2177_s10 + $0x168] sm:$0xff] }
  0x86   : > { %v500_v25 = vadd.f32 %v422_v16, %v421_v15  ;;  %v497_v29 = vadd.f32 %v420_v18, %v419_v17  ;;  %v413_v30 = vmul.f32 %v2210_v7, %v2251_v23  ;;  %v414_v31 = vmul.f32 %v2214_v8, %v2254_v24  ;;  %v2332_v16 = vld [vmem:[%s2177_s10 + $0x30] sm:$0xff]  ;;  %v2335_v17 = vld [vmem:[%s2177_s10 + $0x38] sm:$0xff]  ;;  %v2338_v18 = vld [vmem:[%s2177_s10 + $0x20] sm:$0xff]  ;;  %p1898_p6 = por %p1897_p4, %p1896_p2 }
  0x87   : > { %v494_v28 = vadd.f32 %v418_v20, %v417_v19  ;;  %v491_v32 = vadd.f32 %v416_v22, %v415_v21  ;;  %v411_v33 = vmul.f32 %v2210_v7, %v2257_v26  ;;  %v412_v34 = vmul.f32 %v2214_v8, %v2260_v27  ;;  %v2341_v19 = vld [vmem:[%s2177_s10 + $0x28] sm:$0xff] }
  0x88   : > { %501 = vadd.xlane.f32.xlu0 %v500_v25  ;;  %v488_v39 = vadd.f32 %v414_v31, %v413_v30  ;;  %v409_v40 = vmul.f32 %v2210_v7, %v2271_v35  ;;  %v410_v41 = vmul.f32 %v2214_v8, %v2274_v36  ;;  %v407_v43 = vmul.f32 %v2210_v7, %v2277_v37  ;;  %v2352_v30 = vld [vmem:[%s2177_s10 + $0x10] sm:$0xff]  ;;  %v2355_v31 = vld [vmem:[%s2177_s10 + $0x18] sm:$0xff]  ;;  %p1899_p0 = pnand %p1898_p6, %p1892_p8 }
  0x89   : > { %495 = vadd.xlane.f32.xlu1 %v494_v28  ;;  %v485_v42 = vadd.f32 %v412_v34, %v411_v33  ;;  %v408_v44 = vmul.f32 %v2214_v8, %v2280_v38  ;;  %v405_v51 = vmul.f32 %v2210_v7, %v2291_v45  ;;  %v406_v52 = vmul.f32 %v2214_v8, %v2294_v46 }
  0x8a   : > { %v482_v50 = vadd.f32 %v410_v41, %v409_v40  ;;  %v403_v54 = vmul.f32 %v2210_v7, %v2298_v48  ;;  %v404_v55 = vmul.f32 %v2214_v8, %v2301_v49  ;;  %v401_v61 = vmul.f32 %v2210_v7, %v2312_v56 }
  0x8b   : > { %v479_v53 = vadd.f32 %v408_v44, %v407_v43  ;;  %v476_v60 = vadd.f32 %v406_v52, %v405_v51  ;;  %v402_v62 = vmul.f32 %v2214_v8, %v2315_v57  ;;  %v399_v6 = vmul.f32 %v2210_v7, %v2318_v58  ;;  %v2368_v43 = vld [vmem:[%s2177_s10 + $0x1f0] sm:$0xff]  ;;  %v2371_v44 = vld [vmem:[%s2177_s10 + $0x1f8] sm:$0xff]  ;;  %v2375_v51 = vld [vmem:[%s2177_s10 + $0x1e0] sm:$0xff] }
  0x8c   : > { %498 = vadd.xlane.f32.xlu0 %v497_v29  ;;  %v473_v63 = vadd.f32 %v404_v55, %v403_v54  ;;  %v400_v15 = vmul.f32 %v2214_v8, %v2321_v59  ;;  %v397_v21 = vmul.f32 %v2210_v7, %v2332_v16  ;;  %v398_v22 = vmul.f32 %v2214_v8, %v2335_v17  ;;  %v2378_v52 = vld [vmem:[%s2177_s10 + $0x1e8] sm:$0xff] }
  0x8d   : > { %492 = vadd.xlane.f32.xlu1 %v491_v32  ;;  %v470_v20 = vadd.f32 %v402_v62, %v401_v61  ;;  %v395_v28 = vmul.f32 %v2210_v7, %v2338_v18  ;;  %v396_v29 = vmul.f32 %v2214_v8, %v2341_v19  ;;  %v2358_v32 = vld [vmem:[%s2177_s10] sm:$0xff]  ;;  %v393_v34 = vmul.f32 %v2210_v7, %v2352_v30  ;;  %v2389_v62 = vld [vmem:[%s2177_s10 + $0x1d0] sm:$0xff] }
  0x8e   : > { %v467_v25 = vadd.f32 %v400_v15, %v399_v6  ;;  %v464_v33 = vadd.f32 %v398_v22, %v397_v21  ;;  %v391_v41 = vmul.f32 %v2210_v7, %v2358_v32  ;;  %2905 = vst [vmem:[#allocation18_spill] sm:$0xff] %v2368_v43  ;;  %2906 = vst [vmem:[#allocation19_spill] sm:$0xff] %v2371_v44  ;;  %v2395_v6 = vld [vmem:[%s2177_s10 + $0x1c0] sm:$0xff]  ;;  %v2398_v15 = vld [vmem:[%s2177_s10 + $0x1c8] sm:$0xff] }
  0x8f   : > { %v461_v40 = vadd.f32 %v396_v29, %v395_v28  ;;  %2907 = vst [vmem:[#allocation20_spill] sm:$0xff] %v2375_v51  ;;  %2908 = vst [vmem:[#allocation21_spill] sm:$0xff] %v2378_v52  ;;  %v453_v54 = vmul.f32 %v2210_v7, %v2368_v43  ;;  %v452_v61 = vmul.f32 %v2214_v8, %v2378_v52 }
  0x90   : > { %489 = vadd.xlane.f32.xlu0 %v488_v39  ;;  %v394_v39 = vmul.f32 %v2214_v8, %v2355_v31  ;;  %2909 = vst [vmem:[#allocation22_spill] sm:$0xff] %v2389_v62  ;;  %2911 = vst [vmem:[#allocation24_spill] sm:$0xff] %v2395_v6  ;;  %v449_v21 = vmul.f32 %v2210_v7, %v2389_v62  ;;  %v447_v28 = vmul.f32 %v2210_v7, %v2395_v6  ;;  %v2498_v6 = vld [vmem:[%s2177_s10 + $0x128] sm:$0xff] }
  0x91   : > { %486 = vadd.xlane.f32.xlu1 %v485_v42  ;;  %v392_v42 = vmul.f32 %v2214_v8, %v282_v47  ;;  %v454_v47 = vmul.f32 %v2214_v8, %v2371_v44  ;;  %2912 = vst [vmem:[#allocation25_spill] sm:$0xff] %v2398_v15  ;;  %v448_v29 = vmul.f32 %v2214_v8, %v2398_v15 }
  0x92   : > { %v436_v44 = vmul.f32 %v2214_v8, %v2458_v3 }
  0x93   : > { %v455_v55 = vadd.f32 %v392_v42, %v391_v41 }
  0x94   : > { %483 = vadd.xlane.f32.xlu0 %v482_v50  ;;  %v2863_v50 = vmov 0.0  }
  0x95   : > { %480 = vadd.xlane.f32.xlu1 %v479_v53  ;;  %655 = vmatprep.subr.mxu0 %v2863_v50  ;;  %v458_v53 = vadd.f32 %v394_v39, %v393_v34  ;;  %v2412_v34 = vld [vmem:[%s2177_s10 + $0x1b8] sm:$0xff]  ;;  %v2415_v39 = vld [vmem:[%s2177_s10 + $0x1a0] sm:$0xff] }
  0x96   : > { %2914 = vst [vmem:[#allocation27_spill] sm:$0xff] %v2412_v34  ;;  %2915 = vst [vmem:[#allocation28_spill] sm:$0xff] %v2415_v39 }
  0x98   : > { %477 = vadd.xlane.f32.xlu0 %v476_v60  ;;  %v451_v60 = vmul.f32 %v2210_v7, %v2375_v51  ;;  %v2478_v51 = vld [vmem:[%s2177_s10 + $0x148] sm:$0xff] }
  0x99   : > { %474 = vadd.xlane.f32.xlu1 %v473_v63  ;;  %v2392_v63 = vld [vmem:[%s2177_s10 + $0x1d8] sm:$0xff] }
  0x9a   : > { %2910 = vst [vmem:[#allocation23_spill] sm:$0xff] %v2392_v63  ;;  %v450_v22 = vmul.f32 %v2214_v8, %v2392_v63  ;;  %v432_v63 = vmul.f32 %v2214_v8, %v2478_v51 }
  0x9c   : > { %471 = vadd.xlane.f32.xlu0 %v470_v20  ;;  %v548_v20 = vadd.f32 %v454_v47, %v453_v54  ;;  %v542_v41 = vadd.f32 %v450_v22, %v449_v21  ;;  %v539_v54 = vadd.f32 %v448_v29, %v447_v28  ;;  %v443_v47 = vmul.f32 %v2210_v7, %v2415_v39  ;;  %v2438_v21 = vld [vmem:[%s2177_s10 + $0x188] sm:$0xff]  ;;  %v2509_v39 = vld [vmem:[%s2177_s10 + $0x110] sm:$0xff] }
  0x9d   : > { %468 = vadd.xlane.f32.xlu1 %v467_v25  ;;  %v545_v25 = vadd.f32 %v452_v61, %v451_v60  ;;  %v2429_v60 = vld [vmem:[%s2177_s10 + $0x190] sm:$0xff]  ;;  %v2432_v61 = vld [vmem:[%s2177_s10 + $0x198] sm:$0xff]  ;;  %2920 = vst [vmem:[#allocation33_spill] sm:$0xff] %v2438_v21  ;;  %v440_v50 = vmul.f32 %v2214_v8, %v2438_v21 }
  0x9e   : > { %2917 = vst [vmem:[#allocation30_spill] sm:$0xff] %v2429_v60  ;;  %2918 = vst [vmem:[#allocation31_spill] sm:$0xff] %v2432_v61  ;;  %v442_v28 = vmul.f32 %v2214_v8, %v2432_v61 }
  0xa0   : > { %465 = vadd.xlane.f32.xlu0 %v464_v33  ;;  %v2409_v33 = vld [vmem:[%s2177_s10 + $0x1b0] sm:$0xff] }
  0xa1   : > { %462 = vadd.xlane.f32.xlu1 %v461_v40  ;;  %2913 = vst [vmem:[#allocation26_spill] sm:$0xff] %v2409_v33  ;;  %v2418_v40 = vld [vmem:[%s2177_s10 + $0x1a8] sm:$0xff]  ;;  %v445_v42 = vmul.f32 %v2210_v7, %v2409_v33 }
  0xa2   : > { %2916 = vst [vmem:[#allocation29_spill] sm:$0xff] %v2418_v40 }
  0xa4   : > { %459 = vadd.xlane.f32.xlu0 %v458_v53  ;;  %v446_v53 = vmul.f32 %v2214_v8, %v2412_v34  ;;  %v428_v34 = vmul.f32 %v2214_v8, %v2498_v6 }
  0xa5   : > { %456 = vadd.xlane.f32.xlu1 %v455_v55  ;;  %v444_v55 = vmul.f32 %v2214_v8, %v2418_v40  ;;  %v2512_v40 = vld [vmem:[%s2177_s10 + $0x118] sm:$0xff] }
  0xa6   : > { %v536_v22 = vadd.f32 %v446_v53, %v445_v42  ;;  %v2452_v42 = vld [vmem:[%s2177_s10 + $0x178] sm:$0xff]  ;;  %v2455_v53 = vld [vmem:[%s2177_s10 + $0x160] sm:$0xff] }
  0xa7   : > { %v533_v29 = vadd.f32 %v444_v55, %v443_v47  ;;  %v438_v55 = vmul.f32 %v2214_v8, %v2452_v42  ;;  %v435_v43 = vmul.f32 %v2210_v7, %v2455_v53 }
  0xa8   : > { %549 = vadd.xlane.f32.xlu0 %v548_v20  ;;  %v2435_v20 = vld [vmem:[%s2177_s10 + $0x180] sm:$0xff] }
  0xa9   : > { %546 = vadd.xlane.f32.xlu1 %v545_v25  ;;  %2919 = vst [vmem:[#allocation32_spill] sm:$0xff] %v2435_v20  ;;  %v441_v25 = vmul.f32 %v2210_v7, %v2429_v60  ;;  %v439_v0 = vmul.f32 %v2210_v7, %v2435_v20  ;;  %v521_v52 = vadd.f32 %v436_v44, %v435_v43 }
  0xab   : > { %v527_v2 = vadd.f32 %v440_v50, %v439_v0 }
  0xac   : > { %543 = vadd.xlane.f32.xlu0 %v542_v41  ;;  %v2449_v41 = vld [vmem:[%s2177_s10 + $0x170] sm:$0xff] }
  0xad   : > { %540 = vadd.xlane.f32.xlu1 %v539_v54  ;;  %2921 = vst [vmem:[#allocation34_spill] sm:$0xff] %v2449_v41  ;;  %v530_v54 = vadd.f32 %v442_v28, %v441_v25  ;;  %v437_v47 = vmul.f32 %v2210_v7, %v2449_v41  ;;  %v2472_v25 = vld [vmem:[%s2177_s10 + $0x158] sm:$0xff]  ;;  %v2475_v28 = vld [vmem:[%s2177_s10 + $0x140] sm:$0xff] }
  0xae   : > { %v434_v50 = vmul.f32 %v2214_v8, %v2472_v25  ;;  %v431_v62 = vmul.f32 %v2210_v7, %v2475_v28 }
  0xb0   : > { %537 = vadd.xlane.f32.xlu0 %v536_v22  ;;  %v2469_v22 = vld [vmem:[%s2177_s10 + $0x150] sm:$0xff]  ;;  %v515_v15 = vadd.f32 %v432_v63, %v431_v62  ;;  %v426_v62 = vmul.f32 %v2214_v8, %v2512_v40 }
  0xb1   : > { %534 = vadd.xlane.f32.xlu1 %v533_v29  ;;  %v524_v29 = vadd.f32 %v438_v55, %v437_v47  ;;  %v433_v0 = vmul.f32 %v2210_v7, %v2469_v22  ;;  %v2492_v47 = vld [vmem:[%s2177_s10 + $0x138] sm:$0xff]  ;;  %v2495_v55 = vld [vmem:[%s2177_s10 + $0x120] sm:$0xff] }
  0xb2   : > { %v430_v44 = vmul.f32 %v2214_v8, %v2492_v47  ;;  %v427_v33 = vmul.f32 %v2210_v7, %v2495_v55 }
  0xb4   : > { %531 = vadd.xlane.f32.xlu0 %v530_v54  ;;  %v2489_v54 = vld [vmem:[%s2177_s10 + $0x130] sm:$0xff]  ;;  %v509_v63 = vadd.f32 %v428_v34, %v427_v33 }
  0xb5   : > { %528 = vadd.xlane.f32.xlu1 %v527_v2  ;;  %v518_v2 = vadd.f32 %v434_v50, %v433_v0  ;;  %v429_v43 = vmul.f32 %v2210_v7, %v2489_v54  ;;  %v2518_v0 = vld [vmem:[%s2177_s10 + $0x108] sm:$0xff] }
  0xb6   : > { %v424_v61 = vmul.f32 %v2214_v8, %v2518_v0 }
  0xb7   : > { %v512_v50 = vadd.f32 %v430_v44, %v429_v43  ;;  %v2923_v43 = vsub.s32 0, %v2198_v1 }
  0xb8   : > { %525 = vadd.xlane.f32.xlu0 %v524_v29  ;;  %v2515_v29 = vld [vmem:[%s2177_s10 + $0x100] sm:$0xff] }
  0xb9   : > { %522 = vadd.xlane.f32.xlu1 %v521_v52  ;;  %v425_v52 = vmul.f32 %v2210_v7, %v2509_v39  ;;  %v423_v60 = vmul.f32 %v2210_v7, %v2515_v29 }
  0xbb   : > { %v506_v20 = vadd.f32 %v426_v62, %v425_v52  ;;  %v503_v21 = vadd.f32 %v424_v61, %v423_v60 }
  0xbc   : > { %519 = vadd.xlane.f32.xlu0 %v518_v2  ;;  %v2528_v2 = vld [vmem:[#allocation7] sm:$0xff] }
  0xbd   : > { %516 = vadd.xlane.f32.xlu1 %v515_v15  ;;  %2922 = vst [vmem:[#allocation35_spill] sm:$0xff] %v2528_v2  ;;  %v2533_v44 = vrot.slane %v2528_v2, %v2923_v43  ;;  %v2924_v15 = vsub.s32 1, %v2198_v1 }
  0xbf   : > { %v2538_v7 = vrot.slane %v2528_v2, %v2924_v15 }
  0xc0   : > { %513 = vadd.xlane.f32.xlu0 %v512_v50 }
  0xc1   : > { %510 = vadd.xlane.f32.xlu1 %v509_v63 }
  0xc4   : > { %507 = vadd.xlane.f32.xlu0 %v506_v20 }
  0xc5   : > { %504 = vadd.xlane.f32.xlu1 %v503_v21 }
 0x111   : > { %v502_v33 = vpop.xlane.xlu0 %501 }
 0x112   : > { %v570_v8 = vmul.f32 %v2533_v44, %v502_v33  ;;  %v496_v34 = vpop.xlane.xlu1 %495  ;;  %v2925_v33 = vmov 0.0  }
 0x113   : > { %v568_v60 = vmul.f32 %v2533_v44, %v496_v34 }
 0x114   : > { %v606_v61 = vadd.f32 %v2538_v7, %v570_v8 }
 0x115   : > { %v499_v20 = vpop.xlane.xlu0 %498  ;;  %v604_v21 = vadd.f32 %v2538_v7, %v568_v60 }
 0x116   : > { %v569_v50 = vmul.f32 %v2533_v44, %v499_v20  ;;  %v638_v52 = vmax.f32 %v606_v61, 0.0  ;;  %v493_v62 = vpop.xlane.xlu1 %492 }
 0x117   : > { %v567_v63 = vmul.f32 %v2533_v44, %v493_v62  ;;  %v636_v41 = vmax.f32 %v604_v21, 0.0 }
 0x118   : > { %v605_v43 = vadd.f32 %v2538_v7, %v569_v50  ;;  %656 = vmatpush1.msra.mxu0 %v638_v52 }
 0x119   : > { %v603_v15 = vadd.f32 %v2538_v7, %v567_v63  ;;  %657 = vmatprep.subr.mxu0 %v2925_v33  ;;  %v490_v2 = vpop.xlane.xlu0 %489 }
 0x11a   : > { %v637_v34 = vmax.f32 %v605_v43, 0.0  ;;  %v566_v8 = vmul.f32 %v2533_v44, %v490_v2  ;;  %v487_v1 = vpop.xlane.xlu1 %486 }
 0x11b   : > { %v565_v60 = vmul.f32 %v2533_v44, %v487_v1  ;;  %v635_v20 = vmax.f32 %v603_v15, 0.0 }
 0x11c   : > { %v602_v61 = vadd.f32 %v2538_v7, %v566_v8  ;;  %658 = vmatpush1.msra.mxu0 %v637_v34 }
 0x11d   : > { %659 = vmatprep.subr.mxu0 %v2925_v33  ;;  %v601_v50 = vadd.f32 %v2538_v7, %v565_v60  ;;  %v484_v52 = vpop.xlane.xlu0 %483 }
 0x11e   : > { %v634_v62 = vmax.f32 %v602_v61, 0.0  ;;  %660 = vmatpush1.msra.mxu0 %v636_v41  ;;  %v564_v63 = vmul.f32 %v2533_v44, %v484_v52  ;;  %v481_v43 = vpop.xlane.xlu1 %480 }
 0x11f   : > { %661 = vmatprep.subr.mxu0 %v2925_v33  ;;  %v563_v2 = vmul.f32 %v2533_v44, %v481_v43  ;;  %v633_v1 = vmax.f32 %v601_v50, 0.0 }
 0x120   : > { %v600_v21 = vadd.f32 %v2538_v7, %v564_v63  ;;  %662 = vmatpush1.msra.mxu0 %v635_v20 }
 0x121   : > { %663 = vmatprep.subr.mxu0 %v2925_v33  ;;  %v599_v15 = vadd.f32 %v2538_v7, %v563_v2  ;;  %v478_v34 = vpop.xlane.xlu0 %477 }
 0x122   : > { %v632_v8 = vmax.f32 %v600_v21, 0.0  ;;  %664 = vmatpush1.msra.mxu0 %v634_v62  ;;  %v562_v41 = vmul.f32 %v2533_v44, %v478_v34  ;;  %v475_v60 = vpop.xlane.xlu1 %474 }
 0x123   : > { %665 = vmatprep.subr.mxu0 %v2925_v33  ;;  %v561_v61 = vmul.f32 %v2533_v44, %v475_v60  ;;  %v631_v52 = vmax.f32 %v599_v15, 0.0 }
 0x124   : > { %v598_v50 = vadd.f32 %v2538_v7, %v562_v41  ;;  %666 = vmatpush1.msra.mxu0 %v633_v1 }
 0x125   : > { %667 = vmatprep.subr.mxu0 %v2925_v33  ;;  %v597_v20 = vadd.f32 %v2538_v7, %v561_v61  ;;  %v472_v63 = vpop.xlane.xlu0 %471 }
 0x126   : > { %v630_v43 = vmax.f32 %v598_v50, 0.0  ;;  %668 = vmatpush1.msra.mxu0 %v632_v8  ;;  %v560_v62 = vmul.f32 %v2533_v44, %v472_v63  ;;  %v469_v2 = vpop.xlane.xlu1 %468 }
 0x127   : > { %669 = vmatprep.subr.mxu0 %v2925_v33  ;;  %v559_v21 = vmul.f32 %v2533_v44, %v469_v2  ;;  %v629_v34 = vmax.f32 %v597_v20, 0.0 }
 0x128   : > { %v596_v15 = vadd.f32 %v2538_v7, %v560_v62  ;;  %670 = vmatpush1.msra.mxu0 %v631_v52 }
 0x129   : > { %671 = vmatprep.subr.mxu0 %v2925_v33  ;;  %v595_v1 = vadd.f32 %v2538_v7, %v559_v21  ;;  %v466_v41 = vpop.xlane.xlu0 %465 }
 0x12a   : > { %v628_v60 = vmax.f32 %v596_v15, 0.0  ;;  %672 = vmatpush1.msra.mxu0 %v630_v43  ;;  %v558_v8 = vmul.f32 %v2533_v44, %v466_v41  ;;  %v463_v61 = vpop.xlane.xlu1 %462 }
 0x12b   : > { %673 = vmatprep.subr.mxu0 %v2925_v33  ;;  %v557_v50 = vmul.f32 %v2533_v44, %v463_v61  ;;  %v627_v63 = vmax.f32 %v595_v1, 0.0 }
 0x12c   : > { %v594_v20 = vadd.f32 %v2538_v7, %v558_v8  ;;  %674 = vmatpush1.msra.mxu0 %v629_v34 }
 0x12d   : > { %675 = vmatprep.subr.mxu0 %v2925_v33  ;;  %v593_v52 = vadd.f32 %v2538_v7, %v557_v50  ;;  %v460_v62 = vpop.xlane.xlu0 %459 }
 0x12e   : > { %v626_v2 = vmax.f32 %v594_v20, 0.0  ;;  %676 = vmatpush1.msra.mxu0 %v628_v60  ;;  %v556_v43 = vmul.f32 %v2533_v44, %v460_v62  ;;  %v457_v21 = vpop.xlane.xlu1 %456 }
 0x12f   : > { %677 = vmatprep.subr.mxu0 %v2925_v33  ;;  %v555_v15 = vmul.f32 %v2533_v44, %v457_v21  ;;  %v625_v41 = vmax.f32 %v593_v52, 0.0 }
 0x130   : > { %v592_v1 = vadd.f32 %v2538_v7, %v556_v43  ;;  %678 = vmatpush1.msra.mxu0 %v627_v63 }
 0x131   : > { %679 = vmatprep.subr.mxu0 %v2925_v33  ;;  %v591_v34 = vadd.f32 %v2538_v7, %v555_v15  ;;  %v550_v8 = vpop.xlane.xlu0 %549 }
 0x132   : > { %v624_v61 = vmax.f32 %v592_v1, 0.0  ;;  %680 = vmatpush1.msra.mxu0 %v626_v2  ;;  %v586_v60 = vmul.f32 %v2533_v44, %v550_v8  ;;  %v547_v50 = vpop.xlane.xlu1 %546 }
 0x133   : > { %681 = vmatprep.subr.mxu0 %v2925_v33  ;;  %v585_v20 = vmul.f32 %v2533_v44, %v547_v50  ;;  %v623_v62 = vmax.f32 %v591_v34, 0.0 }
 0x134   : > { %v622_v52 = vadd.f32 %v2538_v7, %v586_v60  ;;  %682 = vmatpush1.msra.mxu0 %v625_v41 }
 0x135   : > { %683 = vmatprep.subr.mxu0 %v2925_v33  ;;  %v621_v63 = vadd.f32 %v2538_v7, %v585_v20  ;;  %v544_v43 = vpop.xlane.xlu0 %543 }
 0x136   : > { %v654_v21 = vmax.f32 %v622_v52, 0.0  ;;  %684 = vmatpush1.msra.mxu0 %v624_v61  ;;  %v584_v2 = vmul.f32 %v2533_v44, %v544_v43  ;;  %v541_v15 = vpop.xlane.xlu1 %540 }
 0x137   : > { %685 = vmatprep.subr.mxu0 %v2925_v33  ;;  %v583_v1 = vmul.f32 %v2533_v44, %v541_v15  ;;  %v653_v8 = vmax.f32 %v621_v63, 0.0 }
 0x138   : > { %v620_v34 = vadd.f32 %v2538_v7, %v584_v2  ;;  %686 = vmatpush1.msra.mxu0 %v623_v62 }
 0x139   : > { %687 = vmatprep.subr.mxu0 %v2925_v33  ;;  %v619_v41 = vadd.f32 %v2538_v7, %v583_v1  ;;  %v538_v60 = vpop.xlane.xlu0 %537 }
 0x13a   : > { %v652_v50 = vmax.f32 %v620_v34, 0.0  ;;  %688 = vmatpush2.msra.mxu0 %v654_v21  ;;  %v582_v61 = vmul.f32 %v2533_v44, %v538_v60  ;;  %v535_v20 = vpop.xlane.xlu1 %534 }
 0x13b   : > { %689 = vmatprep.subr.mxu0 %v2925_v33  ;;  %v581_v52 = vmul.f32 %v2533_v44, %v535_v20  ;;  %v651_v43 = vmax.f32 %v619_v41, 0.0 }
 0x13c   : > { %v618_v63 = vadd.f32 %v2538_v7, %v582_v61  ;;  %690 = vmatpush2.msra.mxu0 %v653_v8 }
 0x13d   : > { %691 = vmatprep.subr.mxu0 %v2925_v33  ;;  %v617_v62 = vadd.f32 %v2538_v7, %v581_v52  ;;  %v532_v2 = vpop.xlane.xlu0 %531 }
 0x13e   : > { %v650_v15 = vmax.f32 %v618_v63, 0.0  ;;  %692 = vmatpush2.msra.mxu0 %v652_v50  ;;  %v580_v21 = vmul.f32 %v2533_v44, %v532_v2  ;;  %v529_v1 = vpop.xlane.xlu1 %528 }
 0x13f   : > { %693 = vmatprep.subr.mxu0 %v2925_v33  ;;  %v579_v34 = vmul.f32 %v2533_v44, %v529_v1  ;;  %v649_v60 = vmax.f32 %v617_v62, 0.0 }
 0x140   : > { %v616_v41 = vadd.f32 %v2538_v7, %v580_v21  ;;  %694 = vmatpush2.msra.mxu0 %v651_v43 }
 0x141   : > { %695 = vmatprep.subr.mxu0 %v2925_v33  ;;  %v615_v8 = vadd.f32 %v2538_v7, %v579_v34  ;;  %v526_v61 = vpop.xlane.xlu0 %525 }
 0x142   : > { %v648_v20 = vmax.f32 %v616_v41, 0.0  ;;  %696 = vmatpush2.msra.mxu0 %v650_v15  ;;  %v578_v50 = vmul.f32 %v2533_v44, %v526_v61  ;;  %v523_v52 = vpop.xlane.xlu1 %522 }
 0x143   : > { %697 = vmatprep.subr.mxu0 %v2925_v33  ;;  %v577_v63 = vmul.f32 %v2533_v44, %v523_v52  ;;  %v647_v2 = vmax.f32 %v615_v8, 0.0 }
 0x144   : > { %v614_v62 = vadd.f32 %v2538_v7, %v578_v50  ;;  %698 = vmatpush2.msra.mxu0 %v649_v60 }
 0x145   : > { %699 = vmatprep.subr.mxu0 %v2925_v33  ;;  %v613_v43 = vadd.f32 %v2538_v7, %v577_v63  ;;  %v520_v21 = vpop.xlane.xlu0 %519 }
 0x146   : > { %v646_v1 = vmax.f32 %v614_v62, 0.0  ;;  %700 = vmatpush2.msra.mxu0 %v648_v20  ;;  %v576_v15 = vmul.f32 %v2533_v44, %v520_v21  ;;  %v517_v34 = vpop.xlane.xlu1 %516 }
 0x147   : > { %701 = vmatprep.subr.mxu0 %v2925_v33  ;;  %v575_v41 = vmul.f32 %v2533_v44, %v517_v34  ;;  %v645_v61 = vmax.f32 %v613_v43, 0.0 }
 0x148   : > { %v612_v8 = vadd.f32 %v2538_v7, %v576_v15  ;;  %702 = vmatpush2.msra.mxu0 %v647_v2 }
 0x149   : > { %703 = vmatprep.subr.mxu0 %v2925_v33  ;;  %v611_v60 = vadd.f32 %v2538_v7, %v575_v41  ;;  %v514_v50 = vpop.xlane.xlu0 %513 }
 0x14a   : > { %v644_v52 = vmax.f32 %v612_v8, 0.0  ;;  %704 = vmatpush2.msra.mxu0 %v646_v1  ;;  %v574_v20 = vmul.f32 %v2533_v44, %v514_v50  ;;  %v511_v63 = vpop.xlane.xlu1 %510 }
 0x14b   : > { %705 = vmatprep.subr.mxu0 %v2925_v33  ;;  %v573_v62 = vmul.f32 %v2533_v44, %v511_v63  ;;  %v643_v21 = vmax.f32 %v611_v60, 0.0  ;;  %v362_v63 = vld [vmem:[#allocation8 + $0x78] sm:$0xff] }
 0x14c   : > { %v610_v43 = vadd.f32 %v2538_v7, %v574_v20  ;;  %706 = vmatpush2.msra.mxu0 %v645_v61  ;;  %1585 = vmatprep.subr.mxu1 %v362_v63 }
 0x14d   : > { %707 = vmatprep.subr.mxu0 %v2925_v33  ;;  %v609_v2 = vadd.f32 %v2538_v7, %v573_v62  ;;  %v508_v15 = vpop.xlane.xlu0 %507  ;;  %v361_v62 = vld [vmem:[#allocation8 + $0x70] sm:$0xff]  ;;  %1586 = vmatpush3.msra.mxu1 %v362_v63 }
 0x14e   : > { %v642_v34 = vmax.f32 %v610_v43, 0.0  ;;  %708 = vmatpush2.msra.mxu0 %v644_v52  ;;  %v572_v1 = vmul.f32 %v2533_v44, %v508_v15  ;;  %v505_v41 = vpop.xlane.xlu1 %504  ;;  %1587 = vmatprep.subr.mxu1 %v361_v62  ;;  %v357_v43 = vld [vmem:[#allocation8 + $0x50] sm:$0xff] }
 0x14f   : > { %709 = vmatprep.subr.mxu0 %v2925_v33  ;;  %v571_v8 = vmul.f32 %v2533_v44, %v505_v41  ;;  %v641_v50 = vmax.f32 %v609_v2, 0.0  ;;  %v360_v44 = vld [vmem:[#allocation8 + $0x68] sm:$0xff]  ;;  %1588 = vmatpush3.msra.mxu1 %v361_v62 }
 0x150   : > { %v608_v60 = vadd.f32 %v2538_v7, %v572_v1  ;;  %710 = vmatpush2.msra.mxu0 %v643_v21  ;;  %1589 = vmatprep.subr.mxu1 %v360_v44  ;;  %v358_v21 = vld [vmem:[#allocation8 + $0x58] sm:$0xff] }
 0x151   : > { %711 = vmatprep.subr.mxu0 %v2925_v33  ;;  %v607_v61 = vadd.f32 %v2538_v7, %v571_v8  ;;  %v359_v7 = vld [vmem:[#allocation8 + $0x60] sm:$0xff]  ;;  %1590 = vmatpush3.msra.mxu1 %v360_v44 }
 0x152   : > { %v640_v20 = vmax.f32 %v608_v60, 0.0  ;;  %712 = vmatpush2.msra.mxu0 %v642_v34  ;;  %1591 = vmatprep.subr.mxu1 %v359_v7 }
 0x153   : > { %713 = vmatprep.subr.mxu0 %v2925_v33  ;;  %v639_v52 = vmax.f32 %v607_v61, 0.0  ;;  %1592 = vmatpush3.msra.mxu1 %v359_v7 }
 0x154   : > { %714 = vmatpush2.msra.mxu0 %v641_v50  ;;  %1593 = vmatprep.subr.mxu1 %v358_v21 }
 0x155   : > { %715 = vmatprep.subr.mxu0 %v2925_v33  ;;  %1594 = vmatpush3.msra.mxu1 %v358_v21 }
 0x156   : > { %716 = vmatpush2.msra.mxu0 %v640_v20  ;;  %1595 = vmatprep.subr.mxu1 %v357_v43 }
 0x157   : > { %717 = vmatprep.subr.mxu0 %v2925_v33  ;;  %v356_v33 = vld [vmem:[#allocation8 + $0x48] sm:$0xff]  ;;  %1596 = vmatpush3.msra.mxu1 %v357_v43 }
 0x158   : > { %718 = vmatpush2.msra.mxu0 %v639_v52  ;;  %1597 = vmatprep.subr.mxu1 %v356_v33 }
 0x159   : > { %720 = vmatmul.mubr.f32.vlgmr.msra.gmra.mxu0 %v2358_v32  ;;  %v355_v32 = vld [vmem:[#allocation8 + $0x40] sm:$0xff]  ;;  %1598 = vmatpush3.msra.mxu1 %v356_v33 }
 0x15a   : > { %724 = vmatprep.mubr.f32.mxu0 %v2355_v31  ;;  %v354_v31 = vld [vmem:[#allocation8 + $0x38] sm:$0xff]  ;;  %1599 = vmatprep.subr.mxu1 %v355_v32 }
 0x15b   : > { %1600 = vmatpush3.msra.mxu1 %v355_v32 }
 0x15c   : > { %1601 = vmatprep.subr.mxu1 %v354_v31 }
 0x15d   : > { %725 = vmatmul.mubr.f32.gmra.mxu0 %v2352_v30  ;;  %v353_v30 = vld [vmem:[#allocation8 + $0x30] sm:$0xff]  ;;  %1602 = vmatpush3.msra.mxu1 %v354_v31 }
 0x15e   : > { %729 = vmatprep.mubr.f32.mxu0 %v2341_v19  ;;  %v352_v19 = vld [vmem:[#allocation8 + $0x28] sm:$0xff]  ;;  %1603 = vmatprep.subr.mxu1 %v353_v30 }
 0x15f   : > { %1604 = vmatpush3.msra.mxu1 %v353_v30 }
 0x160   : > { %1605 = vmatprep.subr.mxu1 %v352_v19 }
 0x161   : > { %730 = vmatmul.mubr.f32.gmra.mxu0 %v2338_v18  ;;  %v351_v18 = vld [vmem:[#allocation8 + $0x20] sm:$0xff]  ;;  %1606 = vmatpush3.msra.mxu1 %v352_v19 }
 0x162   : > { %734 = vmatprep.mubr.f32.mxu0 %v2335_v17  ;;  %v350_v17 = vld [vmem:[#allocation8 + $0x18] sm:$0xff]  ;;  %1607 = vmatprep.subr.mxu1 %v351_v18 }
 0x163   : > { %1608 = vmatpush3.msra.mxu1 %v351_v18 }
 0x164   : > { %1609 = vmatprep.subr.mxu1 %v350_v17 }
 0x165   : > { %735 = vmatmul.mubr.f32.gmra.mxu0 %v2332_v16  ;;  %v349_v16 = vld [vmem:[#allocation8 + $0x10] sm:$0xff]  ;;  %1610 = vmatpush3.msra.mxu1 %v350_v17 }
 0x166   : > { %739 = vmatprep.mubr.f32.mxu0 %v2321_v59  ;;  %1611 = vmatprep.subr.mxu1 %v349_v16 }
 0x167   : > { %1612 = vmatpush3.msra.mxu1 %v349_v16 }
 0x169   : > { %740 = vmatmul.mubr.f32.gmra.mxu0 %v2318_v58 }
 0x16a   : > { %744 = vmatprep.mubr.f32.mxu0 %v2315_v57 }
 0x16d   : > { %745 = vmatmul.mubr.f32.gmra.mxu0 %v2312_v56 }
 0x16e   : > { %749 = vmatprep.mubr.f32.mxu0 %v2301_v49 }
 0x171   : > { %750 = vmatmul.mubr.f32.gmra.mxu0 %v2298_v48 }
 0x172   : > { %754 = vmatprep.mubr.f32.mxu0 %v2294_v46  ;;  %v2942_v46 = vld [vmem:[#allocation18_spill] sm:$0xff] }
 0x175   : > { %755 = vmatmul.mubr.f32.gmra.mxu0 %v2291_v45  ;;  %v2941_v45 = vld [vmem:[#allocation19_spill] sm:$0xff] }
 0x176   : > { %759 = vmatprep.mubr.f32.mxu0 %v2280_v38  ;;  %v2940_v38 = vld [vmem:[#allocation20_spill] sm:$0xff] }
 0x179   : > { %760 = vmatmul.mubr.f32.gmra.mxu0 %v2277_v37  ;;  %v2939_v37 = vld [vmem:[#allocation21_spill] sm:$0xff] }
 0x17a   : > { %764 = vmatprep.mubr.f32.mxu0 %v2274_v36  ;;  %v2938_v36 = vld [vmem:[#allocation22_spill] sm:$0xff] }
 0x17d   : > { %765 = vmatmul.mubr.f32.gmra.mxu0 %v2271_v35  ;;  %v2937_v35 = vld [vmem:[#allocation23_spill] sm:$0xff] }
 0x17e   : > { %769 = vmatprep.mubr.f32.mxu0 %v2260_v27  ;;  %v2936_v27 = vld [vmem:[#allocation24_spill] sm:$0xff] }
 0x181   : > { %770 = vmatmul.mubr.f32.gmra.mxu0 %v2257_v26  ;;  %v2935_v26 = vld [vmem:[#allocation25_spill] sm:$0xff] }
 0x182   : > { %774 = vmatprep.mubr.f32.mxu0 %v2254_v24  ;;  %v2933_v24 = vld [vmem:[#allocation27_spill] sm:$0xff] }
 0x185   : > { %775 = vmatmul.mubr.f32.gmra.mxu0 %v2251_v23  ;;  %v348_v23 = vld [vmem:[#allocation8 + $0x8] sm:$0xff] }
 0x186   : > { %779 = vmatprep.mubr.f32.mxu0 %v2232_v14  ;;  %1613 = vmatprep.subr.mxu1 %v348_v23  ;;  %v2932_v14 = vld [vmem:[#allocation28_spill] sm:$0xff] }
 0x187   : > { %1614 = vmatpush3.msra.mxu1 %v348_v23 }
 0x189   : > { %780 = vmatmul.mubr.f32.gmra.mxu0 %v2229_v13  ;;  %v2931_v13 = vld [vmem:[#allocation29_spill] sm:$0xff] }
 0x18a   : > { %784 = vmatprep.mubr.f32.mxu0 %v2226_v12  ;;  %v347_v12 = vld [vmem:[#allocation8] sm:$0xff] }
 0x18b   : > { %1615 = vmatprep.subr.mxu1 %v347_v12 }
 0x18c   : > { %1616 = vmatpush3.msra.mxu1 %v347_v12 }
 0x18d   : > { %785 = vmatmul.mubr.f32.gmra.mxu0 %v2223_v11  ;;  %v2930_v11 = vld [vmem:[#allocation30_spill] sm:$0xff] }
 0x18e   : > { %789 = vmatprep.mubr.f32.mxu0 %v2220_v10  ;;  %v2929_v10 = vld [vmem:[#allocation31_spill] sm:$0xff] }
 0x191   : > { %790 = vmatmul.mubr.f32.gmra.mxu0 %v2217_v9  ;;  %v2928_v9 = vld [vmem:[#allocation32_spill] sm:$0xff] }
 0x192   : > { %794 = vmatprep.mubr.f32.mxu0 %v2206_v5  ;;  %v2927_v5 = vld [vmem:[#allocation33_spill] sm:$0xff] }
 0x195   : > { %795 = vmatmul.mubr.f32.gmra.mxu0 %v2203_v4  ;;  %v2926_v4 = vld [vmem:[#allocation34_spill] sm:$0xff] }
 0x196   : > { %799 = vmatprep.mubr.f32.mxu0 %v2518_v0 }
 0x199   : > { %800 = vmatmul.mubr.f32.gmra.mxu0 %v2515_v29 }
 0x19a   : > { %804 = vmatprep.mubr.f32.mxu0 %v2512_v40 }
 0x19d   : > { %805 = vmatmul.mubr.f32.gmra.mxu0 %v2509_v39 }
 0x19e   : > { %809 = vmatprep.mubr.f32.mxu0 %v2498_v6 }
 0x1a1   : > { %810 = vmatmul.mubr.f32.gmra.mxu0 %v2495_v55 }
 0x1a2   : > { %814 = vmatprep.mubr.f32.mxu0 %v2492_v47 }
 0x1a5   : > { %815 = vmatmul.mubr.f32.gmra.mxu0 %v2489_v54 }
 0x1a6   : > { %819 = vmatprep.mubr.f32.mxu0 %v2478_v51 }
 0x1a9   : > { %820 = vmatmul.mubr.f32.gmra.mxu0 %v2475_v28 }
 0x1aa   : > { %824 = vmatprep.mubr.f32.mxu0 %v2472_v25 }
 0x1ad   : > { %825 = vmatmul.mubr.f32.gmra.mxu0 %v2469_v22 }
 0x1ae   : > { %829 = vmatprep.mubr.f32.mxu0 %v2458_v3  ;;  %v2934_v3 = vld [vmem:[#allocation26_spill] sm:$0xff] }
 0x1b1   : > { %830 = vmatmul.mubr.f32.gmra.mxu0 %v2455_v53 }
 0x1b2   : > { %834 = vmatprep.mubr.f32.mxu0 %v2452_v42 }
 0x1b5   : > { %835 = vmatmul.mubr.f32.gmra.mxu0 %v2926_v4 }
 0x1b6   : > { %839 = vmatprep.mubr.f32.mxu0 %v2927_v5 }
 0x1b9   : > { %840 = vmatmul.mubr.f32.gmra.mxu0 %v2928_v9 }
 0x1ba   : > { %844 = vmatprep.mubr.f32.mxu0 %v2929_v10 }
 0x1bd   : > { %845 = vmatmul.mubr.f32.gmra.mxu0 %v2930_v11 }
 0x1be   : > { %849 = vmatprep.mubr.f32.mxu0 %v2931_v13 }
 0x1c1   : > { %850 = vmatmul.mubr.f32.gmra.mxu0 %v2932_v14 }
 0x1c2   : > { %854 = vmatprep.mubr.f32.mxu0 %v2933_v24 }
 0x1c5   : > { %855 = vmatmul.mubr.f32.gmra.mxu0 %v2934_v3 }
 0x1c6   : > { %859 = vmatprep.mubr.f32.mxu0 %v2935_v26 }
 0x1c9   : > { %860 = vmatmul.mubr.f32.gmra.mxu0 %v2936_v27 }
 0x1ca   : > { %864 = vmatprep.mubr.f32.mxu0 %v2937_v35 }
 0x1cd   : > { %865 = vmatmul.mubr.f32.gmra.mxu0 %v2938_v36 }
 0x1ce   : > { %869 = vmatprep.mubr.f32.mxu0 %v2939_v37 }
 0x1d1   : > { %870 = vmatmul.mubr.f32.gmra.mxu0 %v2940_v38 }
 0x1d2   : > { %874 = vmatprep.mubr.f32.mxu0 %v2941_v45 }
 0x1d5   : > { %875 = vmatmul.mubr.f32.gmra.mxu0 %v2942_v46 }
 0x219   : > { %v721_v48 = vpop.f32.mrf.mxu0 }
 0x21a   : > { %1617 = vmatprep.mubr.f32.mxu1 %v721_v48  ;;  %v2943_v48 = vlaneseq }
 0x21b   : > { %v723_v49 = vpop.f32.mrf.mxu0 }
 0x21c   : > { %v2699_v49 = vand.u32 127, %v2943_v48 }
 0x21d   : > { %v726_v56 = vpop.f32.mrf.mxu0 }
 0x21e   : > { %1618 = vmatmul.mubr.f32.vlgmr.msra.gmra.mxu1 %v726_v56  ;;  %v2944_v56 = vld [vmem:[#allocation17_spill] sm:$0xff] }
 0x21f   : > { %v728_v57 = vpop.f32.mrf.mxu0 }
 0x220   : > { %v1147_v57 = vmul.u32 16, %v2944_v56 }
 0x221   : > { %v731_v58 = vpop.f32.mrf.mxu0 }
 0x222   : > { %1620 = vmatprep.mubr.f32.mxu1 %v731_v58  ;;  %v2703_v58 = vadd.s32 128, %v2699_v49  ;;  %vm1149_vm4 = vcmp.ge.s32.totalorder %v2699_v49, %v1147_v57 }
 0x223   : > { %v733_v59 = vpop.f32.mrf.mxu0 }
 0x224   : > { %v1153_v59 = vadd.s32 16, %v1147_v57  ;;  %vm1150_vm0 = vcmp.ge.s32.totalorder %v2703_v58, %v1147_v57 }
 0x225   : > { %v736_v51 = vpop.f32.mrf.mxu0 }
 0x226   : > { %1621 = vmatmul.mubr.f32.gmra.mxu1 %v736_v51  ;;  %vm1156_vm1 = vcmp.lt.s32.totalorder %v2703_v58, %v1153_v59  ;;  %vm1155_vm2 = vcmp.lt.s32.totalorder %v2699_v49, %v1153_v59  ;;  %v1976_v51 = vmov 0.0625  }
 0x227   : > { %v738_v6 = vpop.f32.mrf.mxu0  ;;  %vm1160_vm3 = vmand %vm1150_vm0, %vm1156_vm1 }
 0x228   : > { %vm2710_vm5 = vmand %vm1149_vm4, %vm1155_vm2  ;;  %v373_v6 = vld [vmem:[#allocation8 + $0xc8] sm:$0xff] }
 0x229   : > { %v741_v39 = vpop.f32.mrf.mxu0 }
 0x22a   : > { %1623 = vmatprep.mubr.f32.mxu1 %v741_v39 }
 0x22b   : > { %v743_v40 = vpop.f32.mrf.mxu0 }
 0x22d   : > { %v746_v42 = vpop.f32.mrf.mxu0 }
 0x22e   : > { %1624 = vmatmul.mubr.f32.gmra.mxu1 %v746_v42 }
 0x22f   : > { %v748_v53 = vpop.f32.mrf.mxu0 }
 0x231   : > { %v751_v22 = vpop.f32.mrf.mxu0 }
 0x232   : > { %1626 = vmatprep.mubr.f32.mxu1 %v751_v22 }
 0x233   : > { %v753_v25 = vpop.f32.mrf.mxu0 }
 0x235   : > { %v756_v28 = vpop.f32.mrf.mxu0 }
 0x236   : > { %1627 = vmatmul.mubr.f32.gmra.mxu1 %v756_v28 }
 0x237   : > { %v758_v54 = vpop.f32.mrf.mxu0 }
 0x239   : > { %v761_v47 = vpop.f32.mrf.mxu0 }
 0x23a   : > { %1629 = vmatprep.mubr.f32.mxu1 %v761_v47 }
 0x23b   : > { %v763_v55 = vpop.f32.mrf.mxu0 }
 0x23d   : > { %v766_v29 = vpop.f32.mrf.mxu0 }
 0x23e   : > { %1630 = vmatmul.mubr.f32.gmra.mxu1 %v766_v29 }
 0x23f   : > { %v768_v0 = vpop.f32.mrf.mxu0 }
 0x241   : > { %v771_v2 = vpop.f32.mrf.mxu0 }
 0x242   : > { %1632 = vmatprep.mubr.f32.mxu1 %v771_v2 }
 0x243   : > { %v773_v15 = vpop.f32.mrf.mxu0 }
 0x245   : > { %v776_v34 = vpop.f32.mrf.mxu0 }
 0x246   : > { %1633 = vmatmul.mubr.f32.gmra.mxu1 %v776_v34 }
 0x247   : > { %v778_v1 = vpop.f32.mrf.mxu0 }
 0x249   : > { %v781_v41 = vpop.f32.mrf.mxu0 }
 0x24a   : > { %1635 = vmatprep.mubr.f32.mxu1 %v781_v41 }
 0x24b   : > { %v783_v8 = vpop.f32.mrf.mxu0 }
 0x24d   : > { %v786_v50 = vpop.f32.mrf.mxu0 }
 0x24e   : > { %1636 = vmatmul.mubr.f32.gmra.mxu1 %v786_v50 }
 0x24f   : > { %v788_v60 = vpop.f32.mrf.mxu0 }
 0x251   : > { %v791_v61 = vpop.f32.mrf.mxu0 }
 0x252   : > { %1638 = vmatprep.mubr.f32.mxu1 %v791_v61 }
 0x253   : > { %v793_v20 = vpop.f32.mrf.mxu0 }
 0x255   : > { %v796_v52 = vpop.f32.mrf.mxu0 }
 0x256   : > { %1639 = vmatmul.mubr.f32.gmra.mxu1 %v796_v52 }
 0x257   : > { %v798_v63 = vpop.f32.mrf.mxu0 }
 0x259   : > { %v801_v62 = vpop.f32.mrf.mxu0 }
 0x25a   : > { %1641 = vmatprep.mubr.f32.mxu1 %v801_v62 }
 0x25b   : > { %v803_v44 = vpop.f32.mrf.mxu0 }
 0x25d   : > { %v806_v7 = vpop.f32.mrf.mxu0 }
 0x25e   : > { %1642 = vmatmul.mubr.f32.gmra.mxu1 %v806_v7 }
 0x25f   : > { %v808_v21 = vpop.f32.mrf.mxu0 }
 0x261   : > { %v811_v43 = vpop.f32.mrf.mxu0 }
 0x262   : > { %1644 = vmatprep.mubr.f32.mxu1 %v811_v43  ;;  %v882_v43 = vsub.s32 2, %v2944_v56 }
 0x263   : > { %v813_v33 = vpop.f32.mrf.mxu0 }
 0x265   : > { %v816_v32 = vpop.f32.mrf.mxu0 }
 0x266   : > { %1645 = vmatmul.mubr.f32.gmra.mxu1 %v816_v32  ;;  %v2947_v32 = vld [vmem:[#allocation35_spill] sm:$0xff] }
 0x267   : > { %v818_v31 = vpop.f32.mrf.mxu0 }
 0x268   : > { %v2744_v31 = vrot.slane %v2947_v32, %v882_v43  ;;  %v1146_v32 = vadd.s32 8, %v2944_v56 }
 0x269   : > { %v821_v30 = vpop.f32.mrf.mxu0 }
 0x26a   : > { %1647 = vmatprep.mubr.f32.mxu1 %v821_v30 }
 0x26b   : > { %v823_v19 = vpop.f32.mrf.mxu0 }
 0x26d   : > { %v826_v18 = vpop.f32.mrf.mxu0 }
 0x26e   : > { %1648 = vmatmul.mubr.f32.gmra.mxu1 %v826_v18 }
 0x26f   : > { %v828_v17 = vpop.f32.mrf.mxu0 }
 0x271   : > { %v831_v16 = vpop.f32.mrf.mxu0 }
 0x272   : > { %1650 = vmatprep.mubr.f32.mxu1 %v831_v16 }
 0x273   : > { %v833_v23 = vpop.f32.mrf.mxu0 }
 0x275   : > { %v836_v12 = vpop.f32.mrf.mxu0 }
 0x276   : > { %1651 = vmatmul.mubr.f32.gmra.mxu1 %v836_v12 }
 0x277   : > { %v838_v4 = vpop.f32.mrf.mxu0 }
 0x279   : > { %v841_v5 = vpop.f32.mrf.mxu0 }
 0x27a   : > { %1653 = vmatprep.mubr.f32.mxu1 %v841_v5 }
 0x27b   : > { %v843_v9 = vpop.f32.mrf.mxu0 }
 0x27d   : > { %v846_v10 = vpop.f32.mrf.mxu0 }
 0x27e   : > { %1654 = vmatmul.mubr.f32.gmra.mxu1 %v846_v10 }
 0x27f   : > { %v848_v11 = vpop.f32.mrf.mxu0 }
 0x281   : > { %v851_v13 = vpop.f32.mrf.mxu0 }
 0x282   : > { %1656 = vmatprep.mubr.f32.mxu1 %v851_v13 }
 0x283   : > { %v853_v14 = vpop.f32.mrf.mxu0 }
 0x285   : > { %v856_v24 = vpop.f32.mrf.mxu0 }
 0x286   : > { %1657 = vmatmul.mubr.f32.gmra.mxu1 %v856_v24 }
 0x287   : > { %v858_v3 = vpop.f32.mrf.mxu0 }
 0x289   : > { %v861_v26 = vpop.f32.mrf.mxu0 }
 0x28a   : > { %1659 = vmatprep.mubr.f32.mxu1 %v861_v26 }
 0x28b   : > { %v863_v27 = vpop.f32.mrf.mxu0 }
 0x28d   : > { %v866_v35 = vpop.f32.mrf.mxu0 }
 0x28e   : > { %1660 = vmatmul.mubr.f32.gmra.mxu1 %v866_v35 }
 0x28f   : > { %v868_v36 = vpop.f32.mrf.mxu0 }
 0x291   : > { %v871_v37 = vpop.f32.mrf.mxu0 }
 0x292   : > { %1662 = vmatprep.mubr.f32.mxu1 %v871_v37 }
 0x293   : > { %v873_v38 = vpop.f32.mrf.mxu0 }
 0x295   : > { %v876_v45 = vpop.f32.mrf.mxu0 }
 0x296   : > { %1663 = vmatmul.mubr.f32.gmra.mxu1 %v876_v45 }
 0x297   : > { %v878_v46 = vpop.f32.mrf.mxu0  ;;  %1469 = vmatprep.mubr.msk.f32.mxu1 %vm1160_vm3, %v1976_v51 }
 0x2de   : > { %v2714_v39 = vpop.f32.mrf.mxu1 }
 0x2e0   : > { %v2716_v40 = vpop.f32.mrf.mxu1 }
 0x2e6   : > { %v2718_v42 = vpop.f32.mrf.mxu1 }
 0x2e8   : > { %v2720_v53 = vpop.f32.mrf.mxu1 }
 0x2ee   : > { %v2722_v22 = vpop.f32.mrf.mxu1 }
 0x2f0   : > { %v2724_v25 = vpop.f32.mrf.mxu1 }
 0x2f6   : > { %v2726_v28 = vpop.f32.mrf.mxu1 }
 0x2f8   : > { %v2728_v54 = vpop.f32.mrf.mxu1 }
 0x2fe   : > { %v1631_v47 = vpop.f32.mrf.mxu1 }
 0x2ff   : > { %v996_v57 = vadd.f32 %v1631_v47, %v2744_v31 }
 0x300   : > { %v990_v55 = vpop.f32.mrf.mxu1 }
 0x306   : > { %v1634_v29 = vpop.f32.mrf.mxu1 }
 0x307   : > { %v1006_v27 = vadd.f32 %v1634_v29, %v2744_v31 }
 0x308   : > { %v1000_v0 = vpop.f32.mrf.mxu1 }
 0x309   : > { %v1001_v38 = vadd.f32 %v1000_v0, %v2744_v31  ;;  %v1120_v59 = vmax.f32 %v1006_v27, 0.0  ;;  %v370_v27 = vld [vmem:[#allocation8 + $0xb0] sm:$0xff] }
 0x30e   : > { %v1637_v2 = vpop.f32.mrf.mxu1 }
 0x30f   : > { %v1016_v9 = vadd.f32 %v1637_v2, %v2744_v31 }
 0x310   : > { %v1010_v15 = vpop.f32.mrf.mxu1 }
 0x311   : > { %v1011_v14 = vadd.f32 %v1010_v15, %v2744_v31  ;;  %v1122_v35 = vmax.f32 %v1016_v9, 0.0  ;;  %v991_v15 = vadd.f32 %v990_v55, %v2744_v31 }
 0x313   : > { %v1121_v45 = vmax.f32 %v1011_v14, 0.0  ;;  %v1117_v43 = vmax.f32 %v991_v15, 0.0  ;;  %v1244_v15 = vsub.s32 3, %v2944_v56 }
 0x316   : > { %v1640_v34 = vpop.f32.mrf.mxu1 }
 0x317   : > { %v1026_v19 = vadd.f32 %v1640_v34, %v2744_v31  ;;  %v1119_v34 = vmax.f32 %v1001_v38, 0.0  ;;  %v365_v38 = vld [vmem:[#allocation8 + $0x88] sm:$0xff] }
 0x318   : > { %v1020_v1 = vpop.f32.mrf.mxu1 }
 0x319   : > { %v1021_v16 = vadd.f32 %v1020_v1, %v2744_v31  ;;  %v1124_v10 = vmax.f32 %v1026_v19, 0.0 }
 0x31b   : > { %v1123_v24 = vmax.f32 %v1021_v16, 0.0  ;;  %v1148_v16 = vmul.u32 16, %v1146_v32 }
 0x31d   : > { %v1154_v9 = vadd.s32 16, %v1148_v16  ;;  %vm1152_vm6 = vcmp.ge.s32.totalorder %v2703_v58, %v1148_v16  ;;  %vm1151_vm9 = vcmp.ge.s32.totalorder %v2699_v49, %v1148_v16 }
 0x31e   : > { %v2730_v41 = vpop.f32.mrf.mxu1 }
 0x31f   : > { %vm1158_vm7 = vcmp.lt.s32.totalorder %v2703_v58, %v1154_v9  ;;  %vm1157_vm10 = vcmp.lt.s32.totalorder %v2699_v49, %v1154_v9  ;;  %v377_v58 = vld [vmem:[#allocation8 + $0xe8] sm:$0xff]  ;;  %v375_v49 = vld [vmem:[#allocation8 + $0xd8] sm:$0xff] }
 0x320   : > { %v2732_v8 = vpop.f32.mrf.mxu1  ;;  %vm1162_vm8 = vmand %vm1152_vm6, %vm1158_vm7 }
 0x321   : > { %vm1161_vm11 = vmand %vm1151_vm9, %vm1157_vm10 }
 0x326   : > { %v2734_v50 = vpop.f32.mrf.mxu1 }
 0x328   : > { %v2736_v60 = vpop.f32.mrf.mxu1 }
 0x32e   : > { %v2738_v61 = vpop.f32.mrf.mxu1 }
 0x32f   : > { %v1056_v55 = vadd.f32 %v2738_v61, %v2744_v31  ;;  %v1046_v61 = vadd.f32 %v2734_v50, %v2744_v31  ;;  %v1036_v50 = vadd.f32 %v2730_v41, %v2744_v31 }
 0x330   : > { %v2740_v20 = vpop.f32.mrf.mxu1 }
 0x336   : > { %v1652_v52 = vpop.f32.mrf.mxu1 }
 0x337   : > { %v1066_v0 = vadd.f32 %v1652_v52, %v2744_v31 }
 0x338   : > { %v1060_v63 = vpop.f32.mrf.mxu1 }
 0x339   : > { %v1061_v47 = vadd.f32 %v1060_v63, %v2744_v31  ;;  %v1132_v52 = vmax.f32 %v1066_v0, 0.0  ;;  %v1051_v63 = vadd.f32 %v2740_v20, %v2744_v31  ;;  %v1041_v20 = vadd.f32 %v2736_v60, %v2744_v31 }
 0x33a   : > { %v1031_v60 = vadd.f32 %v2732_v8, %v2744_v31  ;;  %v379_v8 = vld [vmem:[#allocation8 + $0xf8] sm:$0xff] }
 0x33e   : > { %v1655_v62 = vpop.f32.mrf.mxu1 }
 0x33f   : > { %v1076_v46 = vadd.f32 %v1655_v62, %v2744_v31  ;;  %v986_v62 = vadd.f32 %v2726_v28, %v2744_v31 }
 0x340   : > { %v1070_v44 = vpop.f32.mrf.mxu1 }
 0x341   : > { %v1071_v29 = vadd.f32 %v1070_v44, %v2744_v31  ;;  %v1134_v1 = vmax.f32 %v1076_v46, 0.0  ;;  %v981_v44 = vadd.f32 %v2728_v54, %v2744_v31  ;;  %v1116_v28 = vmax.f32 %v986_v62, 0.0 }
 0x342   : > { %v971_v54 = vadd.f32 %v2724_v25, %v2744_v31  ;;  %v961_v25 = vadd.f32 %v2720_v53, %v2744_v31  ;;  %v951_v53 = vadd.f32 %v2716_v40, %v2744_v31  ;;  %v378_v40 = vld [vmem:[#allocation8 + $0xf0] sm:$0xff] }
 0x343   : > { %v1115_v19 = vmax.f32 %v981_v44, 0.0 }
 0x344   : > { %v1109_v14 = vmax.f32 %v951_v53, 0.0 }
 0x346   : > { %v1658_v7 = vpop.f32.mrf.mxu1 }
 0x347   : > { %v1086_v3 = vadd.f32 %v1658_v7, %v2744_v31  ;;  %v1118_v7 = vmax.f32 %v996_v57, 0.0 }
 0x348   : > { %v1080_v21 = vpop.f32.mrf.mxu1 }
 0x349   : > { %v1081_v36 = vadd.f32 %v1080_v21, %v2744_v31  ;;  %v1136_v48 = vmax.f32 %v1086_v3, 0.0  ;;  %v1133_v21 = vmax.f32 %v1071_v29, 0.0  ;;  %v372_v3 = vld [vmem:[#allocation8 + $0xc0] sm:$0xff] }
 0x34b   : > { %v1135_v2 = vmax.f32 %v1081_v36, 0.0  ;;  %v367_v36 = vld [vmem:[#allocation8 + $0x98] sm:$0xff] }
 0x34e   : > { %v1661_v33 = vpop.f32.mrf.mxu1 }
 0x34f   : > { %v1096_v12 = vadd.f32 %v1661_v33, %v2744_v31  ;;  %v976_v33 = vadd.f32 %v2722_v22, %v2744_v31  ;;  %v966_v22 = vadd.f32 %v2718_v42, %v2744_v31  ;;  %v956_v42 = vadd.f32 %v2714_v39, %v2744_v31 }
 0x350   : > { %v1090_v30 = vpop.f32.mrf.mxu1  ;;  %v1125_v39 = vmax.f32 %v1031_v60, 0.0 }
 0x351   : > { %v1091_v11 = vadd.f32 %v1090_v30, %v2744_v31  ;;  %v1138_v26 = vmax.f32 %v1096_v12, 0.0  ;;  %v1131_v30 = vmax.f32 %v1061_v47, 0.0  ;;  %v1113_v12 = vmax.f32 %v971_v54, 0.0 }
 0x352   : > { %v1110_v41 = vmax.f32 %v956_v42, 0.0 }
 0x353   : > { %v1137_v37 = vmax.f32 %v1091_v11, 0.0  ;;  %v1111_v11 = vmax.f32 %v961_v25, 0.0 }
 0x356   : > { %v1664_v18 = vpop.f32.mrf.mxu1 }
 0x357   : > { %v1106_v17 = vadd.f32 %v1664_v18, %v2744_v31  ;;  %v1130_v18 = vmax.f32 %v1056_v55, 0.0 }
 0x358   : > { %v1100_v23 = vpop.f32.mrf.mxu1 }
 0x359   : > { %v1140_v4 = vmax.f32 %v1106_v17, 0.0  ;;  %v1101_v5 = vadd.f32 %v1100_v23, %v2744_v31  ;;  %v1114_v17 = vmax.f32 %v976_v33, 0.0  ;;  %v1129_v23 = vmax.f32 %v1051_v63, 0.0  ;;  %v376_v31 = vld [vmem:[#allocation8 + $0xe0] sm:$0xff] }
 0x35b   : > { %v1139_v13 = vmax.f32 %v1101_v5, 0.0  ;;  %1529 = vmatprep.subr.mxu1 %v1140_v4  ;;  %v1128_v4 = vmax.f32 %v1046_v61, 0.0  ;;  %v1112_v5 = vmax.f32 %v966_v22, 0.0 }
 0x35c   : > { %1530 = vmatpush3.msra.mxu1 %v1124_v10  ;;  %v1127_v10 = vmax.f32 %v1041_v20, 0.0 }
 0x35d   : > { %1531 = vmatprep.subr.mxu1 %v1139_v13  ;;  %v1126_v13 = vmax.f32 %v1036_v50, 0.0 }
 0x35e   : > { %1532 = vmatpush3.msra.mxu1 %v1123_v24  ;;  %v374_v24 = vld [vmem:[#allocation8 + $0xd0] sm:$0xff] }
 0x35f   : > { %1533 = vmatprep.subr.mxu1 %v1138_v26  ;;  %v371_v26 = vld [vmem:[#allocation8 + $0xb8] sm:$0xff] }
 0x360   : > { %1534 = vmatpush3.msra.mxu1 %v1122_v35  ;;  %v368_v35 = vld [vmem:[#allocation8 + $0xa0] sm:$0xff] }
 0x361   : > { %1535 = vmatprep.subr.mxu1 %v1137_v37  ;;  %v366_v37 = vld [vmem:[#allocation8 + $0x90] sm:$0xff] }
 0x362   : > { %1536 = vmatpush3.msra.mxu1 %v1121_v45  ;;  %v364_v45 = vld [vmem:[#allocation8 + $0x80] sm:$0xff] }
 0x363   : > { %1537 = vmatprep.subr.mxu1 %v1136_v48 }
 0x364   : > { %1538 = vmatpush3.msra.mxu1 %v1120_v59 }
 0x365   : > { %1539 = vmatprep.subr.mxu1 %v1135_v2 }
 0x366   : > { %1540 = vmatpush3.msra.mxu1 %v1119_v34  ;;  %v1780_v34 = vld [vmem:[#allocation7] sm:$0xff] }
 0x367   : > { %1541 = vmatprep.subr.mxu1 %v1134_v1  ;;  %v1245_v0 = vrot.slane %v1780_v34, %v1244_v15 }
 0x368   : > { %1542 = vmatpush3.msra.mxu1 %v1118_v7 }
 0x369   : > { %1543 = vmatprep.subr.mxu1 %v1133_v21 }
 0x36a   : > { %1544 = vmatpush3.msra.mxu1 %v1117_v43 }
 0x36b   : > { %1545 = vmatprep.subr.mxu1 %v1132_v52 }
 0x36c   : > { %1546 = vmatpush3.msra.mxu1 %v1116_v28 }
 0x36d   : > { %1547 = vmatprep.subr.mxu1 %v1131_v30 }
 0x36e   : > { %1548 = vmatpush3.msra.mxu1 %v1115_v19 }
 0x36f   : > { %1549 = vmatprep.subr.mxu1 %v1130_v18 }
 0x370   : > { %1550 = vmatpush3.msra.mxu1 %v1114_v17 }
 0x371   : > { %1551 = vmatprep.subr.mxu1 %v1129_v23 }
 0x372   : > { %1552 = vmatpush3.msra.mxu1 %v1113_v12 }
 0x373   : > { %1553 = vmatprep.subr.mxu1 %v1128_v4 }
 0x374   : > { %1554 = vmatpush3.msra.mxu1 %v1112_v5 }
 0x375   : > { %1555 = vmatprep.subr.mxu1 %v1127_v10 }
 0x376   : > { %1556 = vmatpush3.msra.mxu1 %v1111_v11 }
 0x377   : > { %1557 = vmatprep.subr.mxu1 %v1126_v13 }
 0x378   : > { %1558 = vmatpush3.msra.mxu1 %v1110_v41 }
 0x379   : > { %1559 = vmatprep.subr.mxu1 %v1125_v39 }
 0x37a   : > { %1560 = vmatpush3.msra.mxu1 %v1109_v14 }
 0x37b   : > { %1470 = vmatmul.mubr.msk.f32.vlgmr.msra.gmra.mxu1 %vm2710_vm5, %v1976_v51  ;;  %1665 = vmatprep.subr.mxu1 %v379_v8 }
 0x37c   : > { %1471 = vmatprep.mubr.msk.f32.mxu1 %vm1162_vm8, %v1976_v51  ;;  %1666 = vmatpush3.msra.mxu1 %v379_v8 }
 0x37d   : > { %1667 = vmatprep.subr.mxu1 %v378_v40 }
 0x37e   : > { %1668 = vmatpush3.msra.mxu1 %v378_v40 }
 0x37f   : > { %1472 = vmatmul.mubr.msk.f32.gmra.mxu1 %vm1161_vm11, %v1976_v51  ;;  %1669 = vmatprep.subr.mxu1 %v377_v58  ;;  %v369_v51 = vld [vmem:[#allocation8 + $0xa8] sm:$0xff] }
 0x380   : > { %1670 = vmatpush3.msra.mxu1 %v377_v58 }
 0x381   : > { %1671 = vmatprep.subr.mxu1 %v376_v31 }
 0x382   : > { %1672 = vmatpush3.msra.mxu1 %v376_v31 }
 0x383   : > { %1673 = vmatprep.subr.mxu1 %v375_v49 }
 0x384   : > { %1674 = vmatpush3.msra.mxu1 %v375_v49 }
 0x385   : > { %1675 = vmatprep.subr.mxu1 %v374_v24 }
 0x386   : > { %1676 = vmatpush3.msra.mxu1 %v374_v24 }
 0x387   : > { %1677 = vmatprep.subr.mxu1 %v373_v6 }
 0x388   : > { %1678 = vmatpush3.msra.mxu1 %v373_v6 }
 0x389   : > { %1679 = vmatprep.subr.mxu1 %v372_v3 }
 0x38a   : > { %1680 = vmatpush3.msra.mxu1 %v372_v3 }
 0x38b   : > { %1681 = vmatprep.subr.mxu1 %v371_v26 }
 0x38c   : > { %1682 = vmatpush3.msra.mxu1 %v371_v26 }
 0x38d   : > { %1683 = vmatprep.subr.mxu1 %v370_v27 }
 0x38e   : > { %1684 = vmatpush3.msra.mxu1 %v370_v27 }
 0x38f   : > { %1685 = vmatprep.subr.mxu1 %v369_v51 }
 0x390   : > { %1686 = vmatpush3.msra.mxu1 %v369_v51 }
 0x391   : > { %1687 = vmatprep.subr.mxu1 %v368_v35 }
 0x392   : > { %1688 = vmatpush3.msra.mxu1 %v368_v35 }
 0x393   : > { %1689 = vmatprep.subr.mxu1 %v367_v36 }
 0x394   : > { %1690 = vmatpush3.msra.mxu1 %v367_v36 }
 0x395   : > { %1691 = vmatprep.subr.mxu1 %v366_v37 }
 0x396   : > { %1692 = vmatpush3.msra.mxu1 %v366_v37 }
 0x397   : > { %1693 = vmatprep.subr.mxu1 %v365_v38 }
 0x398   : > { %1694 = vmatpush3.msra.mxu1 %v365_v38 }
 0x399   : > { %1695 = vmatprep.subr.mxu1 %v364_v45 }
 0x39a   : > { %1696 = vmatpush3.msra.mxu1 %v364_v45 }
 0x43b   : > { %v1561_v46 = vpop.f32.mrf.mxu1 }
 0x43d   : > { %v1562_v48 = vpop.f32.mrf.mxu1 }
 0x43e   : > { %v1563_v57 = vadd.f32 %v1562_v48, %v1561_v46 }
 0x43f   : > { %v1564_v59 = vpop.f32.mrf.mxu1 }
 0x440   : > { %1697 = vmatprep.mubr.f32.mxu1 %v1563_v57 }
 0x441   : > { %v1565_v29 = vpop.f32.mrf.mxu1 }
 0x442   : > { %v1566_v2 = vadd.f32 %v1565_v29, %v1564_v59 }
 0x444   : > { %1698 = vmatmul.mubr.f32.vlgmr.msra.gmra.mxu1 %v1566_v2 }
 0x504   : > { %v1699_v1 = vpop.f32.mrf.mxu1 }
 0x505   : > { %v1318_v62 = vadd.f32 %v1699_v1, %v1245_v0 }
 0x506   : > { %v1312_v7 = vpop.f32.mrf.mxu1 }
 0x507   : > { %1322 = vst [vmem:[%s280_s8 + $0x8] sm:$0xff] %v1318_v62  ;;  %v1313_v56 = vadd.f32 %v1312_v7, %v1245_v0 }
 0x509   : > { %1321 = vst [vmem:[%s280_s8] sm:$0xff] %v1313_v56 }
 0x50a   : > { %1902 = shalt.err (!%p1899_p0)
}
 0x50b   : > { %s1903_s23 = scalar_lea.hbm %s2810_s24, 256  ;;  %s1907_s29 = scalar_lea.hbm %s2857_s4, 512 }
 0x50c   : > { %p1904_p5 = scmp.ne.s32.totalorder %s2810_s24, %s1903_s23  ;;  %p1908_p3 = scmp.lt.s32.totalorder %s2810_s24, %s2857_s4 }
 0x50d   : > { %p1909_p9 = scmp.lt.s32.totalorder %s1907_s29, %s1903_s23 }
 0x50e   : > { %p1905_p7 = pnand %p1904_p5, %p2948_p12 }
 0x50f   : > { %p1910_p10 = por %p1909_p9, %p1908_p3 }
 0x510   : > { %p1906_p13 = pneg %p1905_p7 }
 0x512   : > { %p1911_p1 = pnand %p1910_p10, %p1906_p13 }
 0x514   : > { %1914 = shalt.err (!%p1911_p1)
}
 0x515   : > { %s1978_s5 = smov 128   ;;  %s1979_s26 = smov 8  }
 0x516   : > { %1712 = dma.vmem_to_hbm [thread:$0]  (%p2948_p12), %s2805_s13, 256, %s2810_s24, %s1324_s12, %s1978_s5, %s1978_s5, %s1979_s26  }
 0x517 PF: > { %s1352_s8 = sand.u32 1, %s1953_s15   ;;  %p2949_p11 = scmp.ne.s32.totalorder %s2892_s28, 0 }
 0x518   : > { %p2950_p8 = scmp.ge.s32.totalorder %s1965_s18, 2  ;;  %s1353_s11 = scalar_lea.sflag [#allocation4], %s1352_s8 }
 0x51a   : > { %p1729_p2 = pnand %p2950_p8, %p2949_p11 }
 0x51c   : > { %p1730_p4 = pneg %p1729_p2 }
 0x51e   : > { %1948 = dma.done.wait (%p1730_p4), %s1353_s11, 256  }
 0x51f   : > { %1950 = vsyncadd (%p1730_p4), %s1353_s11, 4294967040  ;;  %s2951_s14 = sld [smem:[#allocation16_spill]]  ;;  %p21_p6 = scmp.ge.s32.totalorder %s2030_s21, 4  }
 0x520   : > { %s2952_s15 = smov %s1957_s16  ;;  %s2953_s16 = smov %s1961_s17 }
 0x521   : > { %s2955_s18 = smov %s2030_s21  ;;  %23 = sbr.rel (!%p21_p6) target bundleno = 10 (0xa), region = 103 }
 0x525   : > { %s2954_s17 = smov %s2951_s14 }
 0x526   :  { %1358 = vsyncpa [#allocation3], 1 }
 0x527   :  { %1360 = vsyncpa [#allocation3 + $0x1], 1 }
 0x528   :  { %1361 = vsyncpa [#allocation6], 1 }
 0x529   :  { %1363 = vsyncpa [#allocation6 + $0x1], 1 }
 0x52a   :  { %1364 = vsyncpa [#allocation9], 1 }
 0x52b   :  { %1365 = vsyncpa [#allocation4], 1 }
 0x52c   :  { %1367 = vsyncpa [#allocation4 + $0x1], 1 }

</bundles_post_ra>
